<compile_context>
chip_gen: v5e
topology: v5e:2x2
jax: 0.10.0
libtpu: 0.0.40
codegen_flags: <defaults>
</compile_context>

<pallas_src>
import numpy as np

import jax
import jax.numpy as jnp
from jax.experimental import pallas as pl
from jax.experimental.pallas import tpu as pltpu


def _fused_sampler_kernel(coefs_ref,   # SMEM (3*T,)  [coeff1_rev | coeff2_rev | sqrt_var_rev]
                          temb_ref,    # VMEM (CH, T) per-step temb columns (time-reversed)
                          x0_ref,      # VMEM (C, BHW) initial x_T
                          noise_ref,   # VMEM (T-1, C, BHW) per-step noise (time-reversed)
                          w1_ref,      # VMEM (CH, C)
                          w2_ref,      # VMEM (C, CH)
                          out_ref):    # VMEM (C, BHW) x_0
    CH, T = temb_ref.shape

    # Hoist weights and state into vregs once; the whole T-step loop runs on them.
    w1 = w1_ref[...]
    w2 = w2_ref[...]
    x = x0_ref[...]                                                  # (C, BHW)

    # T is a compile-time constant (8): fully unrolled loop gives the scheduler
    # cross-step visibility; only x (a few vregs) is carried between steps.
    # Step i corresponds to time_step = T-1-i (all tables pre-reversed).
    for i in range(T):
        # eps-model; batch folded into the lane-dense N axis (BHW = 512).
        # NOTE: default MXU precision (bf16-pass) — pass precision=HIGHEST if
        # bit parity with a float32 reference is required.
        h = jnp.dot(w1, x, preferred_element_type=jnp.float32)       # (CH, BHW)
        h = jnp.tanh(h + temb_ref[:, i:i + 1])                       # (CH,1) lane-broadcast add
        eps = jnp.dot(w2, h, preferred_element_type=jnp.float32)     # (C, BHW)

        x = coefs_ref[i] * x - coefs_ref[T + i] * eps                # posterior mean
        if i < T - 1:                                                # time_step > 0: add noise
            x = x + coefs_ref[2 * T + i] * noise_ref[i]

    # Single store; final clip fused in.
    out_ref[...] = jnp.clip(x, -1.0, 1.0)


@jax.jit
def gaussian_diffusion_sample(x_T, w1, w2, temb, coeff1, coeff2, sqrt_var, key):
    """Full Algorithm-2 sampling loop, fused into one grid-less pallas_call.

    x_T: (B, C, H, W) NCHW.
    """
    B, C, H, W = x_T.shape
    HW = H * W
    BHW = B * HW
    T = coeff1.shape[0]
    CH = w1.shape[0]

    # Channels on sublanes, (batch x spatial) folded onto the lane axis.
    x0 = jnp.transpose(x_T.reshape(B, C, HW), (1, 0, 2)).reshape(C, BHW)
    x0 = x0.astype(jnp.float32)

    # Flattened 1-D SMEM coefficient table, time-reversed so the kernel indexes
    # by reverse-step i directly.
    coefs = jnp.concatenate(
        [coeff1[::-1], coeff2[::-1], sqrt_var[::-1]]).astype(jnp.float32)     # (3*T,)

    # temb stays tiny and resident: (CH, T) columns, lane-broadcast in-kernel.
    temb_cols = jnp.transpose(temb[::-1].astype(jnp.float32))                 # (CH, T)

    # Only T-1 noise slices: time_step == 0 (last reverse step) uses no noise.
    noise = jax.random.normal(key, (T - 1, C, BHW), dtype=jnp.float32)

    x0_out = pl.pallas_call(
        _fused_sampler_kernel,
        out_shape=jax.ShapeDtypeStruct((C, BHW), jnp.float32),
        in_specs=[
            pl.BlockSpec(memory_space=pltpu.MemorySpace.SMEM),    # coefs (3*T,)
            pl.BlockSpec(memory_space=pltpu.MemorySpace.VMEM),    # temb  (CH, T)
            pl.BlockSpec(memory_space=pltpu.MemorySpace.VMEM),    # x_T   (C, BHW)
            pl.BlockSpec(memory_space=pltpu.MemorySpace.VMEM),    # noise (T-1, C, BHW)
            pl.BlockSpec(memory_space=pltpu.MemorySpace.VMEM),    # w1    (CH, C)
            pl.BlockSpec(memory_space=pltpu.MemorySpace.VMEM),    # w2    (C, CH)
        ],
        out_specs=pl.BlockSpec(memory_space=pltpu.MemorySpace.VMEM),
    )(coefs, temb_cols, x0, noise,
      w1.astype(jnp.float32), w2.astype(jnp.float32))

    # Back to NCHW.
    return jnp.transpose(x0_out.reshape(C, B, HW), (1, 0, 2)).reshape(B, C, H, W)


if __name__ == "__main__":
    # Small shapes consistent with the module's forward.
    B, C, H, W = 2, 4, 16, 16
    CH = 32          # hidden channels of the synthetic eps-model
    T = 8            # number of diffusion steps

    key = jax.random.PRNGKey(0)
    k_x, k_w1, k_w2, k_temb, k_noise = jax.random.split(key, 5)

    # Diffusion schedule (same construction as the PyTorch __init__), in f64.
    betas = np.linspace(1e-4, 0.02, T, dtype=np.float64)
    alphas = 1.0 - betas
    alphas_bar = np.cumprod(alphas)
    alphas_bar_prev = np.concatenate([np.ones((1,), dtype=np.float64),
                                      alphas_bar[:-1]])
    coeff1_np = np.sqrt(1.0 / alphas)
    coeff2_np = coeff1_np * (1.0 - alphas) / np.sqrt(1.0 - alphas_bar)
    posterior_var = betas * (1.0 - alphas_bar_prev) / (1.0 - alphas_bar)
    var = np.concatenate([posterior_var[1:2], betas[1:]])
    sqrt_var_np = np.sqrt(var)

    coeff1 = jnp.asarray(coeff1_np, dtype=jnp.float32)
    coeff2 = jnp.asarray(coeff2_np, dtype=jnp.float32)
    sqrt_var = jnp.asarray(sqrt_var_np, dtype=jnp.float32)

    # Deterministic synthetic eps-model parameters.
    w1 = 0.1 * jax.random.normal(k_w1, (CH, C), dtype=jnp.float32)
    w2 = 0.1 * jax.random.normal(k_w2, (C, CH), dtype=jnp.float32)
    temb = 0.1 * jax.random.normal(k_temb, (T, CH), dtype=jnp.float32)

    # Input x_T, NCHW.
    x_T = jax.random.normal(k_x, (B, C, H, W), dtype=jnp.float32)

    x_0 = gaussian_diffusion_sample(
        x_T, w1, w2, temb, coeff1, coeff2, sqrt_var, k_noise)
    x_0 = jax.block_until_ready(x_0)

    assert x_0.shape == (B, C, H, W)
    assert int(jnp.isnan(x_0).sum()) == 0, "nan in tensor."
    assert float(jnp.abs(x_0).max()) <= 1.0 + 1e-6
    print("KERNEL_OK")
</pallas_src>

<mosaic_0001>
module attributes {stable_mosaic.version = 11 : i64} {
  func.func @_fused_sampler_kernel(%arg0: memref<24xf32, #tpu.memory_space<smem>>, %arg1: memref<32x8xf32, #tpu.memory_space<vmem>>, %arg2: memref<4x512xf32, #tpu.memory_space<vmem>>, %arg3: memref<7x4x512xf32, #tpu.memory_space<vmem>>, %arg4: memref<32x4xf32, #tpu.memory_space<vmem>>, %arg5: memref<4x32xf32, #tpu.memory_space<vmem>>, %arg6: memref<4x512xf32, #tpu.memory_space<vmem>>) attributes {dimension_semantics = [], scalar_prefetch = 0 : i64, scratch_operands = 0 : i64, tpu.core_type = #tpu.core_type<tc>} {
    %c0 = arith.constant 0 : index
    %c0_0 = arith.constant 0 : index
    %0 = vector.load %arg4[%c0, %c0_0] : memref<32x4xf32, #tpu.memory_space<vmem>>, vector<32x4xf32>
    %c0_1 = arith.constant 0 : index
    %c0_2 = arith.constant 0 : index
    %1 = vector.load %arg5[%c0_1, %c0_2] : memref<4x32xf32, #tpu.memory_space<vmem>>, vector<4x32xf32>
    %c0_3 = arith.constant 0 : index
    %c0_4 = arith.constant 0 : index
    %2 = vector.load %arg2[%c0_3, %c0_4] : memref<4x512xf32, #tpu.memory_space<vmem>>, vector<4x512xf32>
    %cst = arith.constant dense<0.000000e+00> : vector<32x512xf32>
    %3 = tpu.matmul %0, %2, %cst {dimension_numbers = #tpu.dot_dimension_numbers<[1], [0], [0], [1], [0, 0, 1, 1], [], []>} : vector<32x4xf32>, vector<4x512xf32>, vector<32x512xf32> -> vector<32x512xf32>
    %c0_5 = arith.constant 0 : index
    %c0_6 = arith.constant 0 : index
    %4 = vector.load %arg1[%c0_5, %c0_6] : memref<32x8xf32, #tpu.memory_space<vmem>>, vector<32x1xf32>
    %5 = vector.broadcast %4 : vector<32x1xf32> to vector<32x512xf32>
    %6 = arith.addf %3, %5 : vector<32x512xf32>
    %7 = math.tanh %6 : vector<32x512xf32>
    %cst_7 = arith.constant dense<0.000000e+00> : vector<4x512xf32>
    %8 = tpu.matmul %1, %7, %cst_7 {dimension_numbers = #tpu.dot_dimension_numbers<[1], [0], [0], [1], [0, 0, 1, 1], [], []>} : vector<4x32xf32>, vector<32x512xf32>, vector<4x512xf32> -> vector<4x512xf32>
    %c0_8 = arith.constant 0 : index
    %9 = memref.load %arg0[%c0_8] : memref<24xf32, #tpu.memory_space<smem>>
    %10 = vector.broadcast %9 : f32 to vector<4x512xf32>
    %11 = arith.mulf %10, %2 : vector<4x512xf32>
    %c8 = arith.constant 8 : index
    %12 = memref.load %arg0[%c8] : memref<24xf32, #tpu.memory_space<smem>>
    %13 = vector.broadcast %12 : f32 to vector<4x512xf32>
    %14 = arith.mulf %13, %8 : vector<4x512xf32>
    %15 = arith.subf %11, %14 : vector<4x512xf32>
    %c16 = arith.constant 16 : index
    %16 = memref.load %arg0[%c16] : memref<24xf32, #tpu.memory_space<smem>>
    %c0_9 = arith.constant 0 : index
    %c0_10 = arith.constant 0 : index
    %c0_11 = arith.constant 0 : index
    %17 = vector.load %arg3[%c0_9, %c0_10, %c0_11] : memref<7x4x512xf32, #tpu.memory_space<vmem>>, vector<1x4x512xf32>
    %18 = vector.shape_cast %17 : vector<1x4x512xf32> to vector<4x512xf32>
    %19 = vector.broadcast %16 : f32 to vector<4x512xf32>
    %20 = arith.mulf %19, %18 : vector<4x512xf32>
    %21 = arith.addf %15, %20 : vector<4x512xf32>
    %cst_12 = arith.constant dense<0.000000e+00> : vector<32x512xf32>
    %22 = tpu.matmul %0, %21, %cst_12 {dimension_numbers = #tpu.dot_dimension_numbers<[1], [0], [0], [1], [0, 0, 1, 1], [], []>} : vector<32x4xf32>, vector<4x512xf32>, vector<32x512xf32> -> vector<32x512xf32>
    %c0_13 = arith.constant 0 : index
    %c1 = arith.constant 1 : index
    %23 = vector.load %arg1[%c0_13, %c1] : memref<32x8xf32, #tpu.memory_space<vmem>>, vector<32x1xf32>
    %24 = vector.broadcast %23 : vector<32x1xf32> to vector<32x512xf32>
    %25 = arith.addf %22, %24 : vector<32x512xf32>
    %26 = math.tanh %25 : vector<32x512xf32>
    %cst_14 = arith.constant dense<0.000000e+00> : vector<4x512xf32>
    %27 = tpu.matmul %1, %26, %cst_14 {dimension_numbers = #tpu.dot_dimension_numbers<[1], [0], [0], [1], [0, 0, 1, 1], [], []>} : vector<4x32xf32>, vector<32x512xf32>, vector<4x512xf32> -> vector<4x512xf32>
    %c1_15 = arith.constant 1 : index
    %28 = memref.load %arg0[%c1_15] : memref<24xf32, #tpu.memory_space<smem>>
    %29 = vector.broadcast %28 : f32 to vector<4x512xf32>
    %30 = arith.mulf %29, %21 : vector<4x512xf32>
    %c9 = arith.constant 9 : index
    %31 = memref.load %arg0[%c9] : memref<24xf32, #tpu.memory_space<smem>>
    %32 = vector.broadcast %31 : f32 to vector<4x512xf32>
    %33 = arith.mulf %32, %27 : vector<4x512xf32>
    %34 = arith.subf %30, %33 : vector<4x512xf32>
    %c17 = arith.constant 17 : index
    %35 = memref.load %arg0[%c17] : memref<24xf32, #tpu.memory_space<smem>>
    %c1_16 = arith.constant 1 : index
    %c0_17 = arith.constant 0 : index
    %c0_18 = arith.constant 0 : index
    %36 = vector.load %arg3[%c1_16, %c0_17, %c0_18] : memref<7x4x512xf32, #tpu.memory_space<vmem>>, vector<1x4x512xf32>
    %37 = vector.shape_cast %36 : vector<1x4x512xf32> to vector<4x512xf32>
    %38 = vector.broadcast %35 : f32 to vector<4x512xf32>
    %39 = arith.mulf %38, %37 : vector<4x512xf32>
    %40 = arith.addf %34, %39 : vector<4x512xf32>
    %cst_19 = arith.constant dense<0.000000e+00> : vector<32x512xf32>
    %41 = tpu.matmul %0, %40, %cst_19 {dimension_numbers = #tpu.dot_dimension_numbers<[1], [0], [0], [1], [0, 0, 1, 1], [], []>} : vector<32x4xf32>, vector<4x512xf32>, vector<32x512xf32> -> vector<32x512xf32>
    %c0_20 = arith.constant 0 : index
    %c2 = arith.constant 2 : index
    %42 = vector.load %arg1[%c0_20, %c2] : memref<32x8xf32, #tpu.memory_space<vmem>>, vector<32x1xf32>
    %43 = vector.broadcast %42 : vector<32x1xf32> to vector<32x512xf32>
    %44 = arith.addf %41, %43 : vector<32x512xf32>
    %45 = math.tanh %44 : vector<32x512xf32>
    %cst_21 = arith.constant dense<0.000000e+00> : vector<4x512xf32>
    %46 = tpu.matmul %1, %45, %cst_21 {dimension_numbers = #tpu.dot_dimension_numbers<[1], [0], [0], [1], [0, 0, 1, 1], [], []>} : vector<4x32xf32>, vector<32x512xf32>, vector<4x512xf32> -> vector<4x512xf32>
    %c2_22 = arith.constant 2 : index
    %47 = memref.load %arg0[%c2_22] : memref<24xf32, #tpu.memory_space<smem>>
    %48 = vector.broadcast %47 : f32 to vector<4x512xf32>
    %49 = arith.mulf %48, %40 : vector<4x512xf32>
    %c10 = arith.constant 10 : index
    %50 = memref.load %arg0[%c10] : memref<24xf32, #tpu.memory_space<smem>>
    %51 = vector.broadcast %50 : f32 to vector<4x512xf32>
    %52 = arith.mulf %51, %46 : vector<4x512xf32>
    %53 = arith.subf %49, %52 : vector<4x512xf32>
    %c18 = arith.constant 18 : index
    %54 = memref.load %arg0[%c18] : memref<24xf32, #tpu.memory_space<smem>>
    %c2_23 = arith.constant 2 : index
    %c0_24 = arith.constant 0 : index
    %c0_25 = arith.constant 0 : index
    %55 = vector.load %arg3[%c2_23, %c0_24, %c0_25] : memref<7x4x512xf32, #tpu.memory_space<vmem>>, vector<1x4x512xf32>
    %56 = vector.shape_cast %55 : vector<1x4x512xf32> to vector<4x512xf32>
    %57 = vector.broadcast %54 : f32 to vector<4x512xf32>
    %58 = arith.mulf %57, %56 : vector<4x512xf32>
    %59 = arith.addf %53, %58 : vector<4x512xf32>
    %cst_26 = arith.constant dense<0.000000e+00> : vector<32x512xf32>
    %60 = tpu.matmul %0, %59, %cst_26 {dimension_numbers = #tpu.dot_dimension_numbers<[1], [0], [0], [1], [0, 0, 1, 1], [], []>} : vector<32x4xf32>, vector<4x512xf32>, vector<32x512xf32> -> vector<32x512xf32>
    %c0_27 = arith.constant 0 : index
    %c3 = arith.constant 3 : index
    %61 = vector.load %arg1[%c0_27, %c3] : memref<32x8xf32, #tpu.memory_space<vmem>>, vector<32x1xf32>
    %62 = vector.broadcast %61 : vector<32x1xf32> to vector<32x512xf32>
    %63 = arith.addf %60, %62 : vector<32x512xf32>
    %64 = math.tanh %63 : vector<32x512xf32>
    %cst_28 = arith.constant dense<0.000000e+00> : vector<4x512xf32>
    %65 = tpu.matmul %1, %64, %cst_28 {dimension_numbers = #tpu.dot_dimension_numbers<[1], [0], [0], [1], [0, 0, 1, 1], [], []>} : vector<4x32xf32>, vector<32x512xf32>, vector<4x512xf32> -> vector<4x512xf32>
    %c3_29 = arith.constant 3 : index
    %66 = memref.load %arg0[%c3_29] : memref<24xf32, #tpu.memory_space<smem>>
    %67 = vector.broadcast %66 : f32 to vector<4x512xf32>
    %68 = arith.mulf %67, %59 : vector<4x512xf32>
    %c11 = arith.constant 11 : index
    %69 = memref.load %arg0[%c11] : memref<24xf32, #tpu.memory_space<smem>>
    %70 = vector.broadcast %69 : f32 to vector<4x512xf32>
    %71 = arith.mulf %70, %65 : vector<4x512xf32>
    %72 = arith.subf %68, %71 : vector<4x512xf32>
    %c19 = arith.constant 19 : index
    %73 = memref.load %arg0[%c19] : memref<24xf32, #tpu.memory_space<smem>>
    %c3_30 = arith.constant 3 : index
    %c0_31 = arith.constant 0 : index
    %c0_32 = arith.constant 0 : index
    %74 = vector.load %arg3[%c3_30, %c0_31, %c0_32] : memref<7x4x512xf32, #tpu.memory_space<vmem>>, vector<1x4x512xf32>
    %75 = vector.shape_cast %74 : vector<1x4x512xf32> to vector<4x512xf32>
    %76 = vector.broadcast %73 : f32 to vector<4x512xf32>
    %77 = arith.mulf %76, %75 : vector<4x512xf32>
    %78 = arith.addf %72, %77 : vector<4x512xf32>
    %cst_33 = arith.constant dense<0.000000e+00> : vector<32x512xf32>
    %79 = tpu.matmul %0, %78, %cst_33 {dimension_numbers = #tpu.dot_dimension_numbers<[1], [0], [0], [1], [0, 0, 1, 1], [], []>} : vector<32x4xf32>, vector<4x512xf32>, vector<32x512xf32> -> vector<32x512xf32>
    %c0_34 = arith.constant 0 : index
    %c4 = arith.constant 4 : index
    %80 = vector.load %arg1[%c0_34, %c4] : memref<32x8xf32, #tpu.memory_space<vmem>>, vector<32x1xf32>
    %81 = vector.broadcast %80 : vector<32x1xf32> to vector<32x512xf32>
    %82 = arith.addf %79, %81 : vector<32x512xf32>
    %83 = math.tanh %82 : vector<32x512xf32>
    %cst_35 = arith.constant dense<0.000000e+00> : vector<4x512xf32>
    %84 = tpu.matmul %1, %83, %cst_35 {dimension_numbers = #tpu.dot_dimension_numbers<[1], [0], [0], [1], [0, 0, 1, 1], [], []>} : vector<4x32xf32>, vector<32x512xf32>, vector<4x512xf32> -> vector<4x512xf32>
    %c4_36 = arith.constant 4 : index
    %85 = memref.load %arg0[%c4_36] : memref<24xf32, #tpu.memory_space<smem>>
    %86 = vector.broadcast %85 : f32 to vector<4x512xf32>
    %87 = arith.mulf %86, %78 : vector<4x512xf32>
    %c12 = arith.constant 12 : index
    %88 = memref.load %arg0[%c12] : memref<24xf32, #tpu.memory_space<smem>>
    %89 = vector.broadcast %88 : f32 to vector<4x512xf32>
    %90 = arith.mulf %89, %84 : vector<4x512xf32>
    %91 = arith.subf %87, %90 : vector<4x512xf32>
    %c20 = arith.constant 20 : index
    %92 = memref.load %arg0[%c20] : memref<24xf32, #tpu.memory_space<smem>>
    %c4_37 = arith.constant 4 : index
    %c0_38 = arith.constant 0 : index
    %c0_39 = arith.constant 0 : index
    %93 = vector.load %arg3[%c4_37, %c0_38, %c0_39] : memref<7x4x512xf32, #tpu.memory_space<vmem>>, vector<1x4x512xf32>
    %94 = vector.shape_cast %93 : vector<1x4x512xf32> to vector<4x512xf32>
    %95 = vector.broadcast %92 : f32 to vector<4x512xf32>
    %96 = arith.mulf %95, %94 : vector<4x512xf32>
    %97 = arith.addf %91, %96 : vector<4x512xf32>
    %cst_40 = arith.constant dense<0.000000e+00> : vector<32x512xf32>
    %98 = tpu.matmul %0, %97, %cst_40 {dimension_numbers = #tpu.dot_dimension_numbers<[1], [0], [0], [1], [0, 0, 1, 1], [], []>} : vector<32x4xf32>, vector<4x512xf32>, vector<32x512xf32> -> vector<32x512xf32>
    %c0_41 = arith.constant 0 : index
    %c5 = arith.constant 5 : index
    %99 = vector.load %arg1[%c0_41, %c5] : memref<32x8xf32, #tpu.memory_space<vmem>>, vector<32x1xf32>
    %100 = vector.broadcast %99 : vector<32x1xf32> to vector<32x512xf32>
    %101 = arith.addf %98, %100 : vector<32x512xf32>
    %102 = math.tanh %101 : vector<32x512xf32>
    %cst_42 = arith.constant dense<0.000000e+00> : vector<4x512xf32>
    %103 = tpu.matmul %1, %102, %cst_42 {dimension_numbers = #tpu.dot_dimension_numbers<[1], [0], [0], [1], [0, 0, 1, 1], [], []>} : vector<4x32xf32>, vector<32x512xf32>, vector<4x512xf32> -> vector<4x512xf32>
    %c5_43 = arith.constant 5 : index
    %104 = memref.load %arg0[%c5_43] : memref<24xf32, #tpu.memory_space<smem>>
    %105 = vector.broadcast %104 : f32 to vector<4x512xf32>
    %106 = arith.mulf %105, %97 : vector<4x512xf32>
    %c13 = arith.constant 13 : index
    %107 = memref.load %arg0[%c13] : memref<24xf32, #tpu.memory_space<smem>>
    %108 = vector.broadcast %107 : f32 to vector<4x512xf32>
    %109 = arith.mulf %108, %103 : vector<4x512xf32>
    %110 = arith.subf %106, %109 : vector<4x512xf32>
    %c21 = arith.constant 21 : index
    %111 = memref.load %arg0[%c21] : memref<24xf32, #tpu.memory_space<smem>>
    %c5_44 = arith.constant 5 : index
    %c0_45 = arith.constant 0 : index
    %c0_46 = arith.constant 0 : index
    %112 = vector.load %arg3[%c5_44, %c0_45, %c0_46] : memref<7x4x512xf32, #tpu.memory_space<vmem>>, vector<1x4x512xf32>
    %113 = vector.shape_cast %112 : vector<1x4x512xf32> to vector<4x512xf32>
    %114 = vector.broadcast %111 : f32 to vector<4x512xf32>
    %115 = arith.mulf %114, %113 : vector<4x512xf32>
    %116 = arith.addf %110, %115 : vector<4x512xf32>
    %cst_47 = arith.constant dense<0.000000e+00> : vector<32x512xf32>
    %117 = tpu.matmul %0, %116, %cst_47 {dimension_numbers = #tpu.dot_dimension_numbers<[1], [0], [0], [1], [0, 0, 1, 1], [], []>} : vector<32x4xf32>, vector<4x512xf32>, vector<32x512xf32> -> vector<32x512xf32>
    %c0_48 = arith.constant 0 : index
    %c6 = arith.constant 6 : index
    %118 = vector.load %arg1[%c0_48, %c6] : memref<32x8xf32, #tpu.memory_space<vmem>>, vector<32x1xf32>
    %119 = vector.broadcast %118 : vector<32x1xf32> to vector<32x512xf32>
    %120 = arith.addf %117, %119 : vector<32x512xf32>
    %121 = math.tanh %120 : vector<32x512xf32>
    %cst_49 = arith.constant dense<0.000000e+00> : vector<4x512xf32>
    %122 = tpu.matmul %1, %121, %cst_49 {dimension_numbers = #tpu.dot_dimension_numbers<[1], [0], [0], [1], [0, 0, 1, 1], [], []>} : vector<4x32xf32>, vector<32x512xf32>, vector<4x512xf32> -> vector<4x512xf32>
    %c6_50 = arith.constant 6 : index
    %123 = memref.load %arg0[%c6_50] : memref<24xf32, #tpu.memory_space<smem>>
    %124 = vector.broadcast %123 : f32 to vector<4x512xf32>
    %125 = arith.mulf %124, %116 : vector<4x512xf32>
    %c14 = arith.constant 14 : index
    %126 = memref.load %arg0[%c14] : memref<24xf32, #tpu.memory_space<smem>>
    %127 = vector.broadcast %126 : f32 to vector<4x512xf32>
    %128 = arith.mulf %127, %122 : vector<4x512xf32>
    %129 = arith.subf %125, %128 : vector<4x512xf32>
    %c22 = arith.constant 22 : index
    %130 = memref.load %arg0[%c22] : memref<24xf32, #tpu.memory_space<smem>>
    %c6_51 = arith.constant 6 : index
    %c0_52 = arith.constant 0 : index
    %c0_53 = arith.constant 0 : index
    %131 = vector.load %arg3[%c6_51, %c0_52, %c0_53] : memref<7x4x512xf32, #tpu.memory_space<vmem>>, vector<1x4x512xf32>
    %132 = vector.shape_cast %131 : vector<1x4x512xf32> to vector<4x512xf32>
    %133 = vector.broadcast %130 : f32 to vector<4x512xf32>
    %134 = arith.mulf %133, %132 : vector<4x512xf32>
    %135 = arith.addf %129, %134 : vector<4x512xf32>
    %cst_54 = arith.constant dense<0.000000e+00> : vector<32x512xf32>
    %136 = tpu.matmul %0, %135, %cst_54 {dimension_numbers = #tpu.dot_dimension_numbers<[1], [0], [0], [1], [0, 0, 1, 1], [], []>} : vector<32x4xf32>, vector<4x512xf32>, vector<32x512xf32> -> vector<32x512xf32>
    %c0_55 = arith.constant 0 : index
    %c7 = arith.constant 7 : index
    %137 = vector.load %arg1[%c0_55, %c7] : memref<32x8xf32, #tpu.memory_space<vmem>>, vector<32x1xf32>
    %138 = vector.broadcast %137 : vector<32x1xf32> to vector<32x512xf32>
    %139 = arith.addf %136, %138 : vector<32x512xf32>
    %140 = math.tanh %139 : vector<32x512xf32>
    %cst_56 = arith.constant dense<0.000000e+00> : vector<4x512xf32>
    %141 = tpu.matmul %1, %140, %cst_56 {dimension_numbers = #tpu.dot_dimension_numbers<[1], [0], [0], [1], [0, 0, 1, 1], [], []>} : vector<4x32xf32>, vector<32x512xf32>, vector<4x512xf32> -> vector<4x512xf32>
    %c7_57 = arith.constant 7 : index
    %142 = memref.load %arg0[%c7_57] : memref<24xf32, #tpu.memory_space<smem>>
    %143 = vector.broadcast %142 : f32 to vector<4x512xf32>
    %144 = arith.mulf %143, %135 : vector<4x512xf32>
    %c15 = arith.constant 15 : index
    %145 = memref.load %arg0[%c15] : memref<24xf32, #tpu.memory_space<smem>>
    %146 = vector.broadcast %145 : f32 to vector<4x512xf32>
    %147 = arith.mulf %146, %141 : vector<4x512xf32>
    %148 = arith.subf %144, %147 : vector<4x512xf32>
    %cst_58 = arith.constant -1.000000e+00 : f32
    %cst_59 = arith.constant 1.000000e+00 : f32
    %149 = vector.broadcast %cst_58 : f32 to vector<4x512xf32>
    %150 = arith.maximumf %149, %148 : vector<4x512xf32>
    %151 = vector.broadcast %cst_59 : f32 to vector<4x512xf32>
    %152 = arith.minimumf %151, %150 : vector<4x512xf32>
    %c0_60 = arith.constant 0 : index
    %c0_61 = arith.constant 0 : index
    %153 = vector.load %arg6[%c0_60, %c0_61] : memref<4x512xf32, #tpu.memory_space<vmem>>, vector<4x512xf32>
    tpu.vector_store %arg6[%c0_60, %c0_61], %152 {strides = array<i32>} : memref<4x512xf32, #tpu.memory_space<vmem>>, vector<4x512xf32>,
    return
  }
}

</mosaic_0001>

<bundles_post_ra>
// kernel: gaussian_diffusion_sample.1
= control target key start
LH: loop header
LB: loop body
LE: loop exit
PB: predicated region body
PF: predicated region fallthrough
CT: control target
= control target key end

     0   :  { %11 = vsyncpa [#allocation3], 0  ;;  %s2868_s24 = smov [#allocation2]   ;;  %s3562_s0 = inlined_call_operand.vmem [shape: f32[24], index: 0, kind: input, shape index: {}]   ;;  %s3563_s1 = inlined_call_operand.vmem [shape: f32[32,8], index: 1, kind: input, shape index: {}]   ;;  %s3564_s2 = inlined_call_operand.vmem [shape: f32[4,512], index: 2, kind: input, shape index: {}]   ;;  %s3565_s3 = inlined_call_operand.vmem [shape: f32[7,4,512], index: 3, kind: input, shape index: {}]   ;;  %s3566_s4 = inlined_call_operand.vmem [shape: f32[32,4], index: 4, kind: input, shape index: {}]   ;;  %s3567_s5 = inlined_call_operand.vmem [shape: f32[4,32], index: 5, kind: input, shape index: {}]   ;;  %s3568_s6 = inlined_call_operand.vmem [shape: f32[4,512], index: 6, kind: output, shape index: {}]  }
   0x1   :  { %s17_s23 = sshll.u32 %s3562_s0, 4  ;;  %s18_s23 = int_to_ptr.vmem [resolvable:$true] %s17_s23 }
   0x2   :  { %20 = dma.vmem_to_smem %s18_s23, 16, %s2868_s24, [#allocation3]  }
   0x3   :  { %2866 = dma.done.wait [#allocation3], 16  }
   0x4   :  { %2867 = vsyncadd [#allocation3], 4294967280 }
   0x5   :  { %35 = sfence }
   0x6   :  { %v2918_v0 = vld [vmem:[%s3564_s2] sm:$0xff]  ;;  %v2923_v1 = vld [vmem:[%s3564_s2 + $0x8] sm:$0xff]  ;;  %v2869_v2 = vmov 0   ;;  %v2936_v4 = vld [vmem:[%s3563_s1 + $0x18] sm:$0xff]  ;;  %vm89_vm0 = vcmask 1043456   ;;  %vm76_vm1 = vcmask 31744  }
   0x7   :  { %69 = vst [vmem:[#allocation1] ss:$2 sm:$0xff] %v2918_v0  ;;  %2572 = vset.pattern.permute.xlu1 %v2869_v2  ;;  %v2929_v3 = vld [vmem:[%s3563_s1 + $0x8] sm:$0xff]  ;;  %2571 = vset.pattern.permute.xlu0 %v2869_v2  ;;  %v2942_v5 = vld [vmem:[%s3566_s4] sm:$0xff]  ;;  %v2956_v11 = vld [vmem:[%s3563_s1 + $0x10] sm:$0xff]  ;;  %vm230_vm2 = vcmask 261120  }
   0x8   :  { %71 = vst [vmem:[#allocation1 + $0x10] ss:$2 sm:$0xff] %v2923_v1  ;;  %54 = vperm.xlu1 %2572, %v2929_v3   ;;  %64 = vperm.xlu0 %2571, %v2936_v4   ;;  %v2951_v10 = vld [vmem:[%s3563_s1] sm:$0xff]  ;;  %v2971_v12 = vld [vmem:[%s3566_s4 + $0x8] sm:$0xff]  ;;  %v2984_v13 = vld [vmem:[%s3566_s4 + $0x10] sm:$0xff]  ;;  %s2358_s21 = sld [smem:[#allocation2 + $0x8]] }
   0x9   :  { %v2997_v14 = vld [vmem:[%s3566_s4 + $0x18] sm:$0xff]  ;;  %v3010_v60 = vld [vmem:[%s3567_s5] sm:$0xf]  ;;  %s314_s22 = sld [smem:[#allocation2]] }
   0xa   :  { %s2359_s23 = sld [smem:[#allocation2 + $0x10]] }
   0xb   :  { %s2385_s28 = sld [smem:[#allocation2 + $0x9]] }
   0xc   :  { %s3084_s0 = sld [smem:[#allocation2 + $0x11]] }
   0xd   :  { %s3086_s29 = sld [smem:[#allocation2 + $0x1]] }
   0xe   :  { %v72_v6 = vld.sshfl [vmem:[#allocation1] sm:$0xff pattern:$0x75316420]  ;;  %v73_v7 = vld.sshfl [vmem:[#allocation1 + $0x8] sm:$0xff pattern:$0x75316420] }
   0xf   :  { %2334 = vmatpush.msk.msra.mxu0 %vm89_vm0, %v72_v6  ;;  %2339 = vmatpush.msk.msra.mxu1 %vm89_vm0, %v73_v7  ;;  %v74_v8 = vld.sshfl [vmem:[#allocation1 + $0x10] sm:$0xff pattern:$0x75316420]  ;;  %v75_v9 = vld.sshfl [vmem:[#allocation1 + $0x18] sm:$0xff pattern:$0x75316420] }
  0x10   :  { %2344 = vmatpush.msk.msra.mxu2 %vm89_vm0, %v74_v8  ;;  %2349 = vmatpush.msk.msra.mxu3 %vm89_vm0, %v75_v9  ;;  %v319_v9 = vstv %s2358_s21  ;;  %s2414_s9 = sld [smem:[#allocation2 + $0xa]] }
  0x11   :  { %2335 = vmatmul.msk.f32.vlgmr.msra.gmra.mxu0 %vm76_vm1, %v2942_v5  ;;  %2340 = vmatmul.msk.f32.vlgmr.msra.gmra.mxu1 %vm76_vm1, %v2942_v5  ;;  %s3154_s10 = sld [smem:[#allocation2 + $0x2]] }
  0x12   :  { %2345 = vmatmul.msk.f32.vlgmr.msra.gmra.mxu2 %vm76_vm1, %v2942_v5  ;;  %2350 = vmatmul.msk.f32.vlgmr.msra.gmra.mxu3 %vm76_vm1, %v2942_v5  ;;  %s3156_s11 = sld [smem:[#allocation2 + $0x12]] }
  0x13   :  { %49 = vperm.xlu1 %2572, %v2951_v10   ;;  %59 = vperm.xlu0 %2571, %v2956_v11   ;;  %s2443_s16 = sld [smem:[#allocation2 + $0xb]] }
  0x14   :  { %s3224_s17 = sld [smem:[#allocation2 + $0x3]] }
  0x15   :  { %s3226_s18 = sld [smem:[#allocation2 + $0x13]] }
  0x16   :  { %s3339_s13 = sld [smem:[#allocation2 + $0x4]] }
  0x17   :  { %s3341_s14 = sld [smem:[#allocation2 + $0x14]] }
  0x18   :  { %s3378_s19 = sld [smem:[#allocation2 + $0x5]] }
  0x19   :  { %2336 = vmatmul.msk.f32.gmra.mxu0 %vm76_vm1, %v2971_v12  ;;  %2341 = vmatmul.msk.f32.gmra.mxu1 %vm76_vm1, %v2971_v12  ;;  %s2501_s20 = sld [smem:[#allocation2 + $0xd]] }
  0x1a   :  { %2346 = vmatmul.msk.f32.gmra.mxu2 %vm76_vm1, %v2971_v12  ;;  %2351 = vmatmul.msk.f32.gmra.mxu3 %vm76_vm1, %v2971_v12  ;;  %s3413_s21 = sld [smem:[#allocation2 + $0x15]] }
  0x1b   :  { %s2530_s26 = sld [smem:[#allocation2 + $0xe]] }
  0x1c   :  { %s3482_s27 = sld [smem:[#allocation2 + $0x6]] }
  0x1d   :  { %s2558_s2 = sld [smem:[#allocation2 + $0x7]] }
  0x21   :  { %2337 = vmatmul.msk.f32.gmra.mxu0 %vm76_vm1, %v2984_v13  ;;  %2342 = vmatmul.msk.f32.gmra.mxu1 %vm76_vm1, %v2984_v13 }
  0x22   :  { %2347 = vmatmul.msk.f32.gmra.mxu2 %vm76_vm1, %v2984_v13  ;;  %2352 = vmatmul.msk.f32.gmra.mxu3 %vm76_vm1, %v2984_v13 }
  0x29   :  { %2338 = vmatmul.msk.f32.gmra.mxu0 %vm76_vm1, %v2997_v14  ;;  %2343 = vmatmul.msk.f32.gmra.mxu1 %vm76_vm1, %v2997_v14 }
  0x2a   :  { %2348 = vmatmul.msk.f32.gmra.mxu2 %vm76_vm1, %v2997_v14  ;;  %2353 = vmatmul.msk.f32.gmra.mxu3 %vm76_vm1, %v2997_v14 }
  0x7a   :  { %v65_v21 = vpop.permute.xlu0 %64  ;;  %v55_v26 = vpop.permute.xlu1 %54 }
  0x85   :  { %v60_v33 = vpop.permute.xlu0 %59  ;;  %v50_v37 = vpop.permute.xlu1 %49 }
  0x8e   :  { %v115_v15 = vpop.f32.mrf.mxu0  ;;  %v144_v16 = vpop.f32.mrf.mxu1 }
  0x8f   :  { %v116_v39 = vadd.f32 %v115_v15, %v50_v37  ;;  %v145_v40 = vadd.f32 %v144_v16, %v50_v37  ;;  %v315_v15 = vstv %s314_s22 }
  0x95   :  { %v173_v17 = vpop.f32.mrf.mxu2  ;;  %v202_v18 = vpop.f32.mrf.mxu3 }
  0x96   :  { %v118_v19 = vpop.f32.mrf.mxu0  ;;  %v147_v20 = vpop.f32.mrf.mxu1  ;;  %v174_v54 = vadd.f32 %v173_v17, %v50_v37  ;;  %v203_v56 = vadd.f32 %v202_v18, %v50_v37 }
  0x97   :  { %v119_v27 = vadd.f32 %v118_v19, %v55_v26  ;;  %v148_v28 = vadd.f32 %v147_v20, %v55_v26  ;;  %v337_v19 = vld [vmem:[%s3565_s3] sm:$0xff]  ;;  %v339_v20 = vstv %s2359_s23 }
  0x99   :  { %2593 = vtanh.f32 %v119_v27 }
  0x9a   :  { %2595 = vtanh.f32 %v148_v28 }
  0x9d   :  { %v176_v22 = vpop.f32.mrf.mxu2  ;;  %v205_v23 = vpop.f32.mrf.mxu3 }
  0x9e   :  { %v121_v24 = vpop.f32.mrf.mxu0  ;;  %v150_v25 = vpop.f32.mrf.mxu1  ;;  %v177_v50 = vadd.f32 %v176_v22, %v55_v26  ;;  %v206_v52 = vadd.f32 %v205_v23, %v55_v26 }
  0x9f   :  { %v122_v36 = vadd.f32 %v121_v24, %v60_v33  ;;  %v151_v38 = vadd.f32 %v150_v25, %v60_v33  ;;  %v2594_v43 = vpop.eup %2593  ;;  %v340_v24 = vmul.f32 %v339_v20, %v337_v19 }
  0xa0   :  { %v2596_v47 = vpop.eup %2595 }
  0xa5   :  { %v179_v29 = vpop.f32.mrf.mxu2  ;;  %v208_v30 = vpop.f32.mrf.mxu3 }
  0xa6   :  { %v124_v31 = vpop.f32.mrf.mxu0  ;;  %v153_v32 = vpop.f32.mrf.mxu1  ;;  %v180_v44 = vadd.f32 %v179_v29, %v60_v33  ;;  %v209_v48 = vadd.f32 %v208_v30, %v60_v33  ;;  %v2870_v30 = vmov 1   ;;  %v317_v33 = vmul.f32 %v315_v15, %v2923_v1 }
  0xa7   :  { %v125_v34 = vadd.f32 %v124_v31, %v65_v21  ;;  %v154_v35 = vadd.f32 %v153_v32, %v65_v21  ;;  %2575 = vset.pattern.permute.xlu1 %v2870_v30  ;;  %2574 = vset.pattern.permute.xlu0 %v2870_v30 }
  0xa8   :  { %350 = vperm.xlu1 %2575, %v2951_v10   ;;  %355 = vperm.xlu0 %2574, %v2929_v3  }
  0xa9   :  { %2597 = vtanh.f32 %v125_v34  ;;  %2573 = vset.pattern.permute.xlu2 %v2870_v30 }
  0xaa   :  { %2599 = vtanh.f32 %v154_v35  ;;  %365 = vperm.xlu2 %2573, %v2936_v4  }
  0xab   :  { %2601 = vtanh.f32 %v122_v36 }
  0xac   :  { %2603 = vtanh.f32 %v151_v38 }
  0xad   :  { %v182_v41 = vpop.f32.mrf.mxu2  ;;  %v211_v42 = vpop.f32.mrf.mxu3  ;;  %2605 = vtanh.f32 %v116_v39 }
  0xae   :  { %v183_v45 = vadd.f32 %v182_v41, %v65_v21  ;;  %v212_v46 = vadd.f32 %v211_v42, %v65_v21  ;;  %2607 = vtanh.f32 %v145_v40  ;;  %v316_v21 = vmul.f32 %v315_v15, %v2918_v0  ;;  %v338_v0 = vld [vmem:[%s3565_s3 + $0x8] sm:$0xff] }
  0xaf   :  { %v2598_v49 = vpop.eup %2597  ;;  %v341_v35 = vmul.f32 %v339_v20, %v338_v0 }
  0xb0   :  { %2609 = vtanh.f32 %v183_v45  ;;  %v2600_v51 = vpop.eup %2599  ;;  %246 = vmatpush.msrb.mxu0 %v2598_v49 }
  0xb1   :  { %2611 = vtanh.f32 %v212_v46  ;;  %v2602_v53 = vpop.eup %2601  ;;  %266 = vmatpush.msrb.mxu1 %v2600_v51 }
  0xb2   :  { %2613 = vtanh.f32 %v180_v44  ;;  %v2604_v55 = vpop.eup %2603  ;;  %247 = vmatpush.msrb.mxu0 %v2602_v53  ;;  %360 = vperm.xlu2 %2573, %v2956_v11  }
  0xb3   :  { %2615 = vtanh.f32 %v209_v48  ;;  %v2606_v57 = vpop.eup %2605  ;;  %267 = vmatpush.msrb.mxu1 %v2604_v55 }
  0xb4   :  { %2617 = vtanh.f32 %v177_v50  ;;  %v2608_v58 = vpop.eup %2607  ;;  %248 = vmatpush.msrb.mxu0 %v2594_v43 }
  0xb5   :  { %2619 = vtanh.f32 %v206_v52  ;;  %268 = vmatpush.msrb.mxu1 %v2596_v47 }
  0xb6   :  { %v2610_v59 = vpop.eup %2609  ;;  %2621 = vtanh.f32 %v174_v54  ;;  %249 = vmatpush.msrb.mxu0 %v2606_v57 }
  0xb7   :  { %v2612_v61 = vpop.eup %2611  ;;  %2623 = vtanh.f32 %v203_v56  ;;  %286 = vmatpush.msrb.mxu2 %v2610_v59  ;;  %269 = vmatpush.msrb.mxu1 %v2608_v58 }
  0xb8   :  { %v2614_v62 = vpop.eup %2613  ;;  %306 = vmatpush.msrb.mxu3 %v2612_v61  ;;  %2355 = vmatmul.msk.f32.vlgmr.msrb.gmra.mxu1 %vm230_vm2, %v3010_v60 }
  0xb9   :  { %v2616_v63 = vpop.eup %2615  ;;  %287 = vmatpush.msrb.mxu2 %v2614_v62  ;;  %2354 = vmatmul.msk.f32.vlgmr.msrb.gmra.mxu0 %vm230_vm2, %v3010_v60 }
  0xba   :  { %v2618_v2 = vpop.eup %2617  ;;  %307 = vmatpush.msrb.mxu3 %v2616_v63 }
  0xbb   :  { %v2620_v6 = vpop.eup %2619  ;;  %288 = vmatpush.msrb.mxu2 %v2618_v2 }
  0xbc   :  { %v2622_v7 = vpop.eup %2621  ;;  %308 = vmatpush.msrb.mxu3 %v2620_v6 }
  0xbd   :  { %v2624_v8 = vpop.eup %2623  ;;  %289 = vmatpush.msrb.mxu2 %v2622_v7 }
  0xbe   :  { %309 = vmatpush.msrb.mxu3 %v2624_v8  ;;  %2356 = vmatmul.msk.f32.vlgmr.msrb.gmra.mxu2 %vm230_vm2, %v3010_v60 }
  0xbf   :  { %2357 = vmatmul.msk.f32.vlgmr.msrb.gmra.mxu3 %vm230_vm2, %v3010_v60 }
 0x104   :  { %v366_v46 = vpop.permute.xlu2 %365 }
 0x10c   :  { %v361_v51 = vpop.permute.xlu2 %360 }
 0x11a   :  { %v356_v54 = vpop.permute.xlu0 %355  ;;  %v351_v57 = vpop.permute.xlu1 %350 }
 0x135   :  { %v271_v16 = vpop.f32.mrf.mxu1 }
 0x136   :  { %v321_v17 = vmul.f32 %v319_v9, %v271_v16  ;;  %v251_v18 = vpop.f32.mrf.mxu0 }
 0x137   :  { %v320_v22 = vmul.f32 %v319_v9, %v251_v18 }
 0x138   :  { %v328_v23 = vrot.slane %v321_v17, 4 }
 0x13a   :  { %v330_v25 = vsel %vm89_vm0, %v320_v22, %v328_v23 }
 0x13b   :  { %v334_v26 = vsub.f32 %v316_v21, %v330_v25 }
 0x13d   :  { %v3025_v27 = vadd.f32 %v340_v24, %v334_v26 }
 0x13f   :  { %370 = vst [vmem:[#allocation1] ss:$2 sm:$0xff] %v3025_v27 }
 0x141   :  { %v291_v28 = vpop.f32.mrf.mxu2 }
 0x142   :  { %v311_v29 = vpop.f32.mrf.mxu3  ;;  %v322_v32 = vmul.f32 %v319_v9, %v291_v28 }
 0x143   :  { %v323_v31 = vmul.f32 %v319_v9, %v311_v29 }
 0x145   :  { %v329_v34 = vrot.slane %v323_v31, 4 }
 0x146   :  { %v374_v37 = vld.sshfl [vmem:[#allocation1 + $0x8] sm:$0xff pattern:$0x75316420]  ;;  %v373_v38 = vld.sshfl [vmem:[#allocation1] sm:$0xff pattern:$0x75316420] }
 0x147   :  { %v331_v36 = vsel %vm89_vm0, %v322_v32, %v329_v34  ;;  %2365 = vmatpush.msk.msra.mxu1 %vm89_vm0, %v374_v37  ;;  %2360 = vmatpush.msk.msra.mxu0 %vm89_vm0, %v373_v38 }
 0x148   :  { %v335_v39 = vsub.f32 %v317_v33, %v331_v36  ;;  %2366 = vmatmul.msk.f32.vlgmr.msra.gmra.mxu1 %vm76_vm1, %v2942_v5  ;;  %2361 = vmatmul.msk.f32.vlgmr.msra.gmra.mxu0 %vm76_vm1, %v2942_v5 }
 0x14a   :  { %v3042_v1 = vadd.f32 %v341_v35, %v335_v39 }
 0x14c   :  { %372 = vst [vmem:[#allocation1 + $0x10] ss:$2 sm:$0xff] %v3042_v1 }
 0x150   :  { %2367 = vmatmul.msk.f32.gmra.mxu1 %vm76_vm1, %v2971_v12  ;;  %2362 = vmatmul.msk.f32.gmra.mxu0 %vm76_vm1, %v2971_v12 }
 0x153   :  { %v375_v40 = vld.sshfl [vmem:[#allocation1 + $0x10] sm:$0xff pattern:$0x75316420]  ;;  %v376_v41 = vld.sshfl [vmem:[#allocation1 + $0x18] sm:$0xff pattern:$0x75316420] }
 0x154   :  { %2370 = vmatpush.msk.msra.mxu2 %vm89_vm0, %v375_v40  ;;  %2375 = vmatpush.msk.msra.mxu3 %vm89_vm0, %v376_v41  ;;  %v602_v41 = vstv %s2385_s28  ;;  %s3484_s28 = sld [smem:[#allocation2 + $0x16]] }
 0x155   :  { %2371 = vmatmul.msk.f32.vlgmr.msra.gmra.mxu2 %vm76_vm1, %v2942_v5  ;;  %2376 = vmatmul.msk.f32.vlgmr.msra.gmra.mxu3 %vm76_vm1, %v2942_v5 }
 0x158   :  { %2368 = vmatmul.msk.f32.gmra.mxu1 %vm76_vm1, %v2984_v13  ;;  %2363 = vmatmul.msk.f32.gmra.mxu0 %vm76_vm1, %v2984_v13 }
 0x15d   :  { %2372 = vmatmul.msk.f32.gmra.mxu2 %vm76_vm1, %v2971_v12  ;;  %2377 = vmatmul.msk.f32.gmra.mxu3 %vm76_vm1, %v2971_v12 }
 0x160   :  { %2369 = vmatmul.msk.f32.gmra.mxu1 %vm76_vm1, %v2997_v14  ;;  %2364 = vmatmul.msk.f32.gmra.mxu0 %vm76_vm1, %v2997_v14 }
 0x165   :  { %2373 = vmatmul.msk.f32.gmra.mxu2 %vm76_vm1, %v2984_v13  ;;  %2378 = vmatmul.msk.f32.gmra.mxu3 %vm76_vm1, %v2984_v13 }
 0x16d   :  { %2374 = vmatmul.msk.f32.gmra.mxu2 %vm76_vm1, %v2997_v14  ;;  %2379 = vmatmul.msk.f32.gmra.mxu3 %vm76_vm1, %v2997_v14 }
 0x1c5   :  { %v431_v42 = vpop.f32.mrf.mxu1  ;;  %v402_v43 = vpop.f32.mrf.mxu0 }
 0x1c6   :  { %v432_v6 = vadd.f32 %v431_v42, %v351_v57  ;;  %v403_v7 = vadd.f32 %v402_v43, %v351_v57 }
 0x1cd   :  { %v434_v44 = vpop.f32.mrf.mxu1  ;;  %v405_v45 = vpop.f32.mrf.mxu0 }
 0x1ce   :  { %v435_v59 = vadd.f32 %v434_v44, %v356_v54  ;;  %v406_v62 = vadd.f32 %v405_v45, %v356_v54  ;;  %v2387_v45 = vld [vmem:[%s3565_s3 + $0x10] sm:$0xff] }
 0x1d5   :  { %v437_v47 = vpop.f32.mrf.mxu1  ;;  %v408_v48 = vpop.f32.mrf.mxu0 }
 0x1d6   :  { %v409_v52 = vadd.f32 %v408_v48, %v361_v51  ;;  %v438_v53 = vadd.f32 %v437_v47, %v361_v51 }
 0x1d8   :  { %v460_v49 = vpop.f32.mrf.mxu2  ;;  %v489_v50 = vpop.f32.mrf.mxu3  ;;  %2625 = vtanh.f32 %v409_v52 }
 0x1d9   :  { %2627 = vtanh.f32 %v438_v53  ;;  %v461_v32 = vadd.f32 %v460_v49, %v351_v57  ;;  %v490_v0 = vadd.f32 %v489_v50, %v351_v57  ;;  %v598_v49 = vstv %s3086_s29 }
 0x1da   :  { %v599_v50 = vmul.f32 %v598_v49, %v3025_v27  ;;  %v2871_v27 = vmov 2  }
 0x1db   :  { %2577 = vset.pattern.permute.xlu1 %v2871_v27  ;;  %2578 = vset.pattern.permute.xlu0 %v2871_v27 }
 0x1dc   :  { %644 = vperm.xlu1 %2577, %v2956_v11   ;;  %634 = vperm.xlu0 %2578, %v2951_v10  }
 0x1dd   :  { %v440_v55 = vpop.f32.mrf.mxu1  ;;  %v411_v56 = vpop.f32.mrf.mxu0  ;;  %2576 = vset.pattern.permute.xlu2 %v2871_v27 }
 0x1de   :  { %v441_v58 = vadd.f32 %v440_v55, %v366_v46  ;;  %v412_v61 = vadd.f32 %v411_v56, %v366_v46  ;;  %v2626_v8 = vpop.eup %2625  ;;  %649 = vperm.xlu2 %2576, %v2936_v4  }
 0x1df   :  { %v2628_v9 = vpop.eup %2627 }
 0x1e0   :  { %v463_v63 = vpop.f32.mrf.mxu2  ;;  %v492_v2 = vpop.f32.mrf.mxu3  ;;  %2629 = vtanh.f32 %v441_v58 }
 0x1e1   :  { %2631 = vtanh.f32 %v412_v61  ;;  %v464_v30 = vadd.f32 %v463_v63, %v356_v54  ;;  %v493_v31 = vadd.f32 %v492_v2, %v356_v54  ;;  %v600_v2 = vmul.f32 %v598_v49, %v3042_v1 }
 0x1e2   :  { %2633 = vtanh.f32 %v435_v59 }
 0x1e3   :  { %2635 = vtanh.f32 %v406_v62  ;;  %v2388_v62 = vld [vmem:[%s3565_s3 + $0x18] sm:$0xff] }
 0x1e4   :  { %2637 = vtanh.f32 %v432_v6 }
 0x1e5   :  { %2639 = vtanh.f32 %v403_v7 }
 0x1e6   :  { %v2630_v15 = vpop.eup %2629  ;;  %639 = vperm.xlu2 %2576, %v2929_v3  }
 0x1e7   :  { %v2632_v16 = vpop.eup %2631  ;;  %549 = vmatpush.msrb.mxu1 %v2630_v15 }
 0x1e8   :  { %v466_v17 = vpop.f32.mrf.mxu2  ;;  %v495_v18 = vpop.f32.mrf.mxu3  ;;  %529 = vmatpush.msrb.mxu0 %v2632_v16 }
 0x1e9   :  { %v2634_v19 = vpop.eup %2633  ;;  %550 = vmatpush.msrb.mxu1 %v2628_v9  ;;  %v467_v25 = vadd.f32 %v466_v17, %v361_v51  ;;  %v496_v29 = vadd.f32 %v495_v18, %v361_v51 }
 0x1ea   :  { %v2636_v20 = vpop.eup %2635  ;;  %530 = vmatpush.msrb.mxu0 %v2626_v8 }
 0x1eb   :  { %v2638_v21 = vpop.eup %2637  ;;  %551 = vmatpush.msrb.mxu1 %v2634_v19 }
 0x1ec   :  { %v2640_v22 = vpop.eup %2639  ;;  %531 = vmatpush.msrb.mxu0 %v2636_v20 }
 0x1ed   :  { %552 = vmatpush.msrb.mxu1 %v2638_v21 }
 0x1ee   :  { %2381 = vmatmul.msk.f32.vlgmr.msrb.gmra.mxu1 %vm230_vm2, %v3010_v60  ;;  %532 = vmatpush.msrb.mxu0 %v2640_v22 }
 0x1ef   :  { %2380 = vmatmul.msk.f32.vlgmr.msrb.gmra.mxu0 %vm230_vm2, %v3010_v60 }
 0x1f0   :  { %v469_v23 = vpop.f32.mrf.mxu2  ;;  %v498_v24 = vpop.f32.mrf.mxu3 }
 0x1f1   :  { %v470_v26 = vadd.f32 %v469_v23, %v366_v46  ;;  %v499_v28 = vadd.f32 %v498_v24, %v366_v46  ;;  %v623_v46 = vstv %s3084_s0 }
 0x1f2   :  { %v624_v51 = vmul.f32 %v2387_v45, %v623_v46  ;;  %v625_v6 = vmul.f32 %v2388_v62, %v623_v46 }
 0x1f3   :  { %2641 = vtanh.f32 %v470_v26 }
 0x1f4   :  { %2643 = vtanh.f32 %v499_v28 }
 0x1f5   :  { %2645 = vtanh.f32 %v467_v25 }
 0x1f6   :  { %2647 = vtanh.f32 %v496_v29 }
 0x1f7   :  { %2649 = vtanh.f32 %v464_v30 }
 0x1f8   :  { %2651 = vtanh.f32 %v493_v31 }
 0x1f9   :  { %v2642_v33 = vpop.eup %2641  ;;  %2653 = vtanh.f32 %v461_v32 }
 0x1fa   :  { %v2644_v34 = vpop.eup %2643  ;;  %2655 = vtanh.f32 %v490_v0  ;;  %569 = vmatpush.msrb.mxu2 %v2642_v33 }
 0x1fb   :  { %v2646_v35 = vpop.eup %2645  ;;  %589 = vmatpush.msrb.mxu3 %v2644_v34 }
 0x1fc   :  { %v2648_v36 = vpop.eup %2647  ;;  %570 = vmatpush.msrb.mxu2 %v2646_v35 }
 0x1fd   :  { %v2650_v37 = vpop.eup %2649  ;;  %590 = vmatpush.msrb.mxu3 %v2648_v36 }
 0x1fe   :  { %v2652_v38 = vpop.eup %2651  ;;  %571 = vmatpush.msrb.mxu2 %v2650_v37 }
 0x1ff   :  { %v2654_v39 = vpop.eup %2653  ;;  %591 = vmatpush.msrb.mxu3 %v2652_v38 }
 0x200   :  { %v2656_v40 = vpop.eup %2655  ;;  %572 = vmatpush.msrb.mxu2 %v2654_v39 }
 0x201   :  { %592 = vmatpush.msrb.mxu3 %v2656_v40  ;;  %2382 = vmatmul.msk.f32.vlgmr.msrb.gmra.mxu2 %vm230_vm2, %v3010_v60 }
 0x202   :  { %2383 = vmatmul.msk.f32.vlgmr.msrb.gmra.mxu3 %vm230_vm2, %v3010_v60 }
 0x238   :  { %v650_v20 = vpop.permute.xlu2 %649 }
 0x240   :  { %v640_v26 = vpop.permute.xlu2 %639 }
 0x24e   :  { %v645_v23 = vpop.permute.xlu1 %644  ;;  %v635_v29 = vpop.permute.xlu0 %634 }
 0x26b   :  { %v554_v42 = vpop.f32.mrf.mxu1 }
 0x26c   :  { %v604_v43 = vmul.f32 %v602_v41, %v554_v42  ;;  %v534_v44 = vpop.f32.mrf.mxu0 }
 0x26d   :  { %v603_v47 = vmul.f32 %v602_v41, %v534_v44 }
 0x26e   :  { %v611_v48 = vrot.slane %v604_v43, 4 }
 0x270   :  { %v613_v52 = vsel %vm89_vm0, %v603_v47, %v611_v48 }
 0x271   :  { %v617_v53 = vsub.f32 %v599_v50, %v613_v52 }
 0x273   :  { %v3095_v54 = vadd.f32 %v624_v51, %v617_v53 }
 0x275   :  { %654 = vst [vmem:[#allocation1] ss:$2 sm:$0xff] %v3095_v54 }
 0x27c   :  { %v657_v55 = vld.sshfl [vmem:[#allocation1] sm:$0xff pattern:$0x75316420]  ;;  %v658_v56 = vld.sshfl [vmem:[#allocation1 + $0x8] sm:$0xff pattern:$0x75316420] }
 0x27d   :  { %2389 = vmatpush.msk.msra.mxu0 %vm89_vm0, %v657_v55  ;;  %2394 = vmatpush.msk.msra.mxu1 %vm89_vm0, %v658_v56 }
 0x27e   :  { %2395 = vmatmul.msk.f32.vlgmr.msra.gmra.mxu1 %vm76_vm1, %v2942_v5  ;;  %2390 = vmatmul.msk.f32.vlgmr.msra.gmra.mxu0 %vm76_vm1, %v2942_v5 }
 0x284   :  { %v574_v57 = vpop.f32.mrf.mxu2 }
 0x285   :  { %v594_v58 = vpop.f32.mrf.mxu3  ;;  %v605_v61 = vmul.f32 %v602_v41, %v574_v57 }
 0x286   :  { %v606_v59 = vmul.f32 %v602_v41, %v594_v58  ;;  %2396 = vmatmul.msk.f32.gmra.mxu1 %vm76_vm1, %v2971_v12  ;;  %2391 = vmatmul.msk.f32.gmra.mxu0 %vm76_vm1, %v2971_v12 }
 0x288   :  { %v612_v63 = vrot.slane %v606_v59, 4 }
 0x28a   :  { %v614_v7 = vsel %vm89_vm0, %v605_v61, %v612_v63 }
 0x28b   :  { %v618_v8 = vsub.f32 %v600_v2, %v614_v7 }
 0x28d   :  { %v3116_v9 = vadd.f32 %v625_v6, %v618_v8 }
 0x28e   :  { %2397 = vmatmul.msk.f32.gmra.mxu1 %vm76_vm1, %v2984_v13  ;;  %2392 = vmatmul.msk.f32.gmra.mxu0 %vm76_vm1, %v2984_v13 }
 0x28f   :  { %656 = vst [vmem:[#allocation1 + $0x10] ss:$2 sm:$0xff] %v3116_v9 }
 0x296   :  { %v659_v15 = vld.sshfl [vmem:[#allocation1 + $0x10] sm:$0xff pattern:$0x75316420]  ;;  %v660_v16 = vld.sshfl [vmem:[#allocation1 + $0x18] sm:$0xff pattern:$0x75316420]  ;;  %2398 = vmatmul.msk.f32.gmra.mxu1 %vm76_vm1, %v2997_v14  ;;  %2393 = vmatmul.msk.f32.gmra.mxu0 %vm76_vm1, %v2997_v14 }
 0x297   :  { %2399 = vmatpush.msk.msra.mxu2 %vm89_vm0, %v659_v15  ;;  %2404 = vmatpush.msk.msra.mxu3 %vm89_vm0, %v660_v16  ;;  %v886_v16 = vstv %s2414_s9 }
 0x298   :  { %2400 = vmatmul.msk.f32.vlgmr.msra.gmra.mxu2 %vm76_vm1, %v2942_v5  ;;  %2405 = vmatmul.msk.f32.vlgmr.msra.gmra.mxu3 %vm76_vm1, %v2942_v5 }
 0x2a0   :  { %2401 = vmatmul.msk.f32.gmra.mxu2 %vm76_vm1, %v2971_v12  ;;  %2406 = vmatmul.msk.f32.gmra.mxu3 %vm76_vm1, %v2971_v12 }
 0x2a8   :  { %2402 = vmatmul.msk.f32.gmra.mxu2 %vm76_vm1, %v2984_v13  ;;  %2407 = vmatmul.msk.f32.gmra.mxu3 %vm76_vm1, %v2984_v13 }
 0x2b0   :  { %2403 = vmatmul.msk.f32.gmra.mxu2 %vm76_vm1, %v2997_v14  ;;  %2408 = vmatmul.msk.f32.gmra.mxu3 %vm76_vm1, %v2997_v14 }
 0x2fb   :  { %v715_v1 = vpop.f32.mrf.mxu1  ;;  %v686_v17 = vpop.f32.mrf.mxu0 }
 0x2fc   :  { %v716_v34 = vadd.f32 %v715_v1, %v635_v29  ;;  %v687_v35 = vadd.f32 %v686_v17, %v635_v29 }
 0x303   :  { %v718_v18 = vpop.f32.mrf.mxu1  ;;  %v689_v19 = vpop.f32.mrf.mxu0 }
 0x304   :  { %v719_v32 = vadd.f32 %v718_v18, %v640_v26  ;;  %v690_v33 = vadd.f32 %v689_v19, %v640_v26  ;;  %v882_v19 = vstv %s3154_s10 }
 0x30b   :  { %v721_v21 = vpop.f32.mrf.mxu1  ;;  %v692_v22 = vpop.f32.mrf.mxu0 }
 0x30c   :  { %v693_v24 = vadd.f32 %v692_v22, %v645_v23  ;;  %v722_v25 = vadd.f32 %v721_v21, %v645_v23  ;;  %v907_v21 = vstv %s3156_s11 }
 0x30e   :  { %2657 = vtanh.f32 %v693_v24  ;;  %v883_v24 = vmul.f32 %v882_v19, %v3095_v54 }
 0x30f   :  { %2659 = vtanh.f32 %v722_v25 }
 0x313   :  { %v724_v28 = vpop.f32.mrf.mxu1  ;;  %v695_v31 = vpop.f32.mrf.mxu0 }
 0x314   :  { %v725_v30 = vadd.f32 %v724_v28, %v650_v20  ;;  %v696_v0 = vadd.f32 %v695_v31, %v650_v20  ;;  %v2658_v37 = vpop.eup %2657 }
 0x315   :  { %v2660_v39 = vpop.eup %2659 }
 0x316   :  { %2661 = vtanh.f32 %v725_v30  ;;  %v2872_v30 = vmov 3  }
 0x317   :  { %2663 = vtanh.f32 %v696_v0  ;;  %2579 = vset.pattern.permute.xlu1 %v2872_v30  ;;  %2580 = vset.pattern.permute.xlu2 %v2872_v30 }
 0x318   :  { %2665 = vtanh.f32 %v719_v32  ;;  %933 = vperm.xlu1 %2579, %v2936_v4   ;;  %928 = vperm.xlu2 %2580, %v2956_v11  }
 0x319   :  { %2667 = vtanh.f32 %v690_v33  ;;  %v884_v33 = vmul.f32 %v882_v19, %v3116_v9 }
 0x31a   :  { %2669 = vtanh.f32 %v716_v34 }
 0x31b   :  { %v744_v36 = vpop.f32.mrf.mxu2  ;;  %v773_v38 = vpop.f32.mrf.mxu3  ;;  %2671 = vtanh.f32 %v687_v35 }
 0x31c   :  { %v2662_v40 = vpop.eup %2661  ;;  %v745_v58 = vadd.f32 %v744_v36, %v635_v29  ;;  %v774_v59 = vadd.f32 %v773_v38, %v635_v29 }
 0x31d   :  { %v2664_v41 = vpop.eup %2663  ;;  %833 = vmatpush.msrb.mxu1 %v2662_v40 }
 0x31e   :  { %v2666_v42 = vpop.eup %2665  ;;  %813 = vmatpush.msrb.mxu0 %v2664_v41 }
 0x31f   :  { %v2668_v43 = vpop.eup %2667  ;;  %834 = vmatpush.msrb.mxu1 %v2660_v39 }
 0x320   :  { %v2670_v44 = vpop.eup %2669  ;;  %814 = vmatpush.msrb.mxu0 %v2658_v37  ;;  %923 = vperm.xlu1 %2579, %v2929_v3   ;;  %v2417_v3 = vld [vmem:[%s3565_s3 + $0x28] sm:$0xff] }
 0x321   :  { %v2672_v45 = vpop.eup %2671  ;;  %835 = vmatpush.msrb.mxu1 %v2666_v42  ;;  %918 = vperm.xlu2 %2580, %v2951_v10   ;;  %v909_v34 = vmul.f32 %v2417_v3, %v907_v21 }
 0x322   :  { %815 = vmatpush.msrb.mxu0 %v2668_v43 }
 0x323   :  { %v747_v46 = vpop.f32.mrf.mxu2  ;;  %v776_v47 = vpop.f32.mrf.mxu3  ;;  %836 = vmatpush.msrb.mxu1 %v2670_v44 }
 0x324   :  { %2410 = vmatmul.msk.f32.vlgmr.msrb.gmra.mxu1 %vm230_vm2, %v3010_v60  ;;  %816 = vmatpush.msrb.mxu0 %v2672_v45  ;;  %v748_v27 = vadd.f32 %v747_v46, %v640_v26  ;;  %v777_v57 = vadd.f32 %v776_v47, %v640_v26 }
 0x325   :  { %2409 = vmatmul.msk.f32.vlgmr.msrb.gmra.mxu0 %vm230_vm2, %v3010_v60 }
 0x32b   :  { %v750_v48 = vpop.f32.mrf.mxu2  ;;  %v779_v49 = vpop.f32.mrf.mxu3 }
 0x32c   :  { %v751_v51 = vadd.f32 %v750_v48, %v645_v23  ;;  %v780_v55 = vadd.f32 %v779_v49, %v645_v23 }
 0x333   :  { %v753_v50 = vpop.f32.mrf.mxu2  ;;  %v782_v53 = vpop.f32.mrf.mxu3 }
 0x334   :  { %v754_v52 = vadd.f32 %v753_v50, %v650_v20  ;;  %v783_v56 = vadd.f32 %v782_v53, %v650_v20  ;;  %v2416_v20 = vld [vmem:[%s3565_s3 + $0x20] sm:$0xff] }
 0x335   :  { %v908_v25 = vmul.f32 %v2416_v20, %v907_v21 }
 0x336   :  { %2673 = vtanh.f32 %v754_v52 }
 0x337   :  { %2675 = vtanh.f32 %v783_v56 }
 0x338   :  { %2677 = vtanh.f32 %v751_v51 }
 0x339   :  { %2679 = vtanh.f32 %v780_v55 }
 0x33a   :  { %2681 = vtanh.f32 %v748_v27 }
 0x33b   :  { %2683 = vtanh.f32 %v777_v57 }
 0x33c   :  { %v2674_v61 = vpop.eup %2673  ;;  %2685 = vtanh.f32 %v745_v58 }
 0x33d   :  { %v2676_v62 = vpop.eup %2675  ;;  %2687 = vtanh.f32 %v774_v59  ;;  %853 = vmatpush.msrb.mxu2 %v2674_v61 }
 0x33e   :  { %v2678_v63 = vpop.eup %2677  ;;  %873 = vmatpush.msrb.mxu3 %v2676_v62 }
 0x33f   :  { %v2680_v2 = vpop.eup %2679  ;;  %854 = vmatpush.msrb.mxu2 %v2678_v63 }
 0x340   :  { %v2682_v6 = vpop.eup %2681  ;;  %874 = vmatpush.msrb.mxu3 %v2680_v2 }
 0x341   :  { %v2684_v7 = vpop.eup %2683  ;;  %855 = vmatpush.msrb.mxu2 %v2682_v6 }
 0x342   :  { %v2686_v8 = vpop.eup %2685  ;;  %875 = vmatpush.msrb.mxu3 %v2684_v7 }
 0x343   :  { %v2688_v15 = vpop.eup %2687  ;;  %856 = vmatpush.msrb.mxu2 %v2686_v8 }
 0x344   :  { %876 = vmatpush.msrb.mxu3 %v2688_v15  ;;  %2411 = vmatmul.msk.f32.vlgmr.msrb.gmra.mxu2 %vm230_vm2, %v3010_v60 }
 0x345   :  { %2412 = vmatmul.msk.f32.vlgmr.msrb.gmra.mxu3 %vm230_vm2, %v3010_v60 }
 0x372   :  { %v929_v43 = vpop.permute.xlu2 %928 }
 0x37b   :  { %v919_v48 = vpop.permute.xlu2 %918 }
 0x38a   :  { %v934_v42 = vpop.permute.xlu1 %933 }
 0x392   :  { %v924_v47 = vpop.permute.xlu1 %923 }
 0x3a1   :  { %v838_v1 = vpop.f32.mrf.mxu1 }
 0x3a2   :  { %v888_v17 = vmul.f32 %v886_v16, %v838_v1  ;;  %v818_v18 = vpop.f32.mrf.mxu0 }
 0x3a3   :  { %v887_v22 = vmul.f32 %v886_v16, %v818_v18 }
 0x3a4   :  { %v895_v23 = vrot.slane %v888_v17, 4 }
 0x3a6   :  { %v897_v26 = vsel %vm89_vm0, %v887_v22, %v895_v23 }
 0x3a7   :  { %v901_v28 = vsub.f32 %v883_v24, %v897_v26 }
 0x3a9   :  { %v3165_v29 = vadd.f32 %v908_v25, %v901_v28 }
 0x3ab   :  { %938 = vst [vmem:[#allocation1] ss:$2 sm:$0xff] %v3165_v29 }
 0x3b2   :  { %v941_v31 = vld.sshfl [vmem:[#allocation1] sm:$0xff pattern:$0x75316420]  ;;  %v942_v32 = vld.sshfl [vmem:[#allocation1 + $0x8] sm:$0xff pattern:$0x75316420] }
 0x3b3   :  { %2418 = vmatpush.msk.msra.mxu0 %vm89_vm0, %v941_v31  ;;  %2423 = vmatpush.msk.msra.mxu1 %vm89_vm0, %v942_v32 }
 0x3b4   :  { %2424 = vmatmul.msk.f32.vlgmr.msra.gmra.mxu1 %vm76_vm1, %v2942_v5  ;;  %2419 = vmatmul.msk.f32.vlgmr.msra.gmra.mxu0 %vm76_vm1, %v2942_v5 }
 0x3bc   :  { %2425 = vmatmul.msk.f32.gmra.mxu1 %vm76_vm1, %v2971_v12  ;;  %2420 = vmatmul.msk.f32.gmra.mxu0 %vm76_vm1, %v2971_v12 }
 0x3c4   :  { %2426 = vmatmul.msk.f32.gmra.mxu1 %vm76_vm1, %v2984_v13  ;;  %2421 = vmatmul.msk.f32.gmra.mxu0 %vm76_vm1, %v2984_v13 }
 0x3c7   :  { %v858_v4 = vpop.f32.mrf.mxu2 }
 0x3c8   :  { %v878_v11 = vpop.f32.mrf.mxu3  ;;  %v889_v0 = vmul.f32 %v886_v16, %v858_v4 }
 0x3c9   :  { %v890_v54 = vmul.f32 %v886_v16, %v878_v11 }
 0x3cb   :  { %v896_v10 = vrot.slane %v890_v54, 4 }
 0x3cc   :  { %2427 = vmatmul.msk.f32.gmra.mxu1 %vm76_vm1, %v2997_v14  ;;  %2422 = vmatmul.msk.f32.gmra.mxu0 %vm76_vm1, %v2997_v14 }
 0x3cd   :  { %v898_v35 = vsel %vm89_vm0, %v889_v0, %v896_v10  ;;  %v1170_v0 = vstv %s2443_s16 }
 0x3ce   :  { %v902_v36 = vsub.f32 %v884_v33, %v898_v35  ;;  %v2445_v35 = vld [vmem:[%s3565_s3 + $0x30] sm:$0xff] }
 0x3d0   :  { %v3195_v37 = vadd.f32 %v909_v34, %v902_v36  ;;  %v1166_v34 = vstv %s3224_s17  ;;  %v1191_v36 = vstv %s3226_s18 }
 0x3d2   :  { %940 = vst [vmem:[#allocation1 + $0x10] ss:$2 sm:$0xff] %v3195_v37 }
 0x3d9   :  { %v943_v38 = vld.sshfl [vmem:[#allocation1 + $0x10] sm:$0xff pattern:$0x75316420]  ;;  %v944_v39 = vld.sshfl [vmem:[#allocation1 + $0x18] sm:$0xff pattern:$0x75316420] }
 0x3da   :  { %2428 = vmatpush.msk.msra.mxu2 %vm89_vm0, %v943_v38  ;;  %2433 = vmatpush.msk.msra.mxu3 %vm89_vm0, %v944_v39 }
 0x3db   :  { %2429 = vmatmul.msk.f32.vlgmr.msra.gmra.mxu2 %vm76_vm1, %v2942_v5  ;;  %2434 = vmatmul.msk.f32.vlgmr.msra.gmra.mxu3 %vm76_vm1, %v2942_v5 }
 0x3e3   :  { %2430 = vmatmul.msk.f32.gmra.mxu2 %vm76_vm1, %v2971_v12  ;;  %2435 = vmatmul.msk.f32.gmra.mxu3 %vm76_vm1, %v2971_v12 }
 0x3eb   :  { %2431 = vmatmul.msk.f32.gmra.mxu2 %vm76_vm1, %v2984_v13  ;;  %2436 = vmatmul.msk.f32.gmra.mxu3 %vm76_vm1, %v2984_v13 }
 0x3f3   :  { %2432 = vmatmul.msk.f32.gmra.mxu2 %vm76_vm1, %v2997_v14  ;;  %2437 = vmatmul.msk.f32.gmra.mxu3 %vm76_vm1, %v2997_v14 }
 0x431   :  { %v999_v9 = vpop.f32.mrf.mxu1  ;;  %v970_v5 = vpop.f32.mrf.mxu0 }
 0x432   :  { %v1000_v53 = vadd.f32 %v999_v9, %v919_v48  ;;  %v971_v55 = vadd.f32 %v970_v5, %v919_v48  ;;  %v1192_v9 = vmul.f32 %v2445_v35, %v1191_v36 }
 0x439   :  { %v1002_v40 = vpop.f32.mrf.mxu1  ;;  %v973_v41 = vpop.f32.mrf.mxu0 }
 0x43a   :  { %v1003_v52 = vadd.f32 %v1002_v40, %v924_v47  ;;  %v974_v14 = vadd.f32 %v973_v41, %v924_v47 }
 0x441   :  { %v1005_v44 = vpop.f32.mrf.mxu1  ;;  %v976_v12 = vpop.f32.mrf.mxu0 }
 0x442   :  { %v977_v45 = vadd.f32 %v976_v12, %v929_v43  ;;  %v1006_v46 = vadd.f32 %v1005_v44, %v929_v43  ;;  %v3243_v44 = vld [vmem:[%s3566_s4] sm:$0xff]  ;;  %v3252_v12 = vld [vmem:[%s3563_s1 + $0x10] sm:$0xff] }
 0x444   :  { %2689 = vtanh.f32 %v977_v45  ;;  %v3258_v45 = vld [vmem:[%s3563_s1 + $0x18] sm:$0xff] }
 0x445   :  { %2691 = vtanh.f32 %v1006_v46  ;;  %v3264_v46 = vld [vmem:[%s3566_s4 + $0x8] sm:$0xff] }
 0x449   :  { %v1008_v49 = vpop.f32.mrf.mxu1  ;;  %v979_v13 = vpop.f32.mrf.mxu0 }
 0x44a   :  { %v1009_v50 = vadd.f32 %v1008_v49, %v934_v42  ;;  %v980_v51 = vadd.f32 %v979_v13, %v934_v42  ;;  %v2690_v56 = vpop.eup %2689  ;;  %v3288_v49 = vld [vmem:[%s3566_s4 + $0x18] sm:$0xff]  ;;  %v3297_v13 = vld [vmem:[%s3563_s1 + $0x8] sm:$0xff] }
 0x44b   :  { %v2692_v27 = vpop.eup %2691 }
 0x44c   :  { %2693 = vtanh.f32 %v1009_v50 }
 0x44d   :  { %2695 = vtanh.f32 %v980_v51 }
 0x44e   :  { %2697 = vtanh.f32 %v1003_v52 }
 0x44f   :  { %2699 = vtanh.f32 %v974_v14 }
 0x450   :  { %2701 = vtanh.f32 %v1000_v53  ;;  %v2446_v53 = vld [vmem:[%s3565_s3 + $0x38] sm:$0xff] }
 0x451   :  { %2703 = vtanh.f32 %v971_v55 }
 0x452   :  { %v2694_v57 = vpop.eup %2693 }
 0x453   :  { %v2696_v58 = vpop.eup %2695  ;;  %1117 = vmatpush.msrb.mxu1 %v2694_v57 }
 0x454   :  { %v2698_v59 = vpop.eup %2697  ;;  %1097 = vmatpush.msrb.mxu0 %v2696_v58 }
 0x455   :  { %v2700_v61 = vpop.eup %2699  ;;  %1118 = vmatpush.msrb.mxu1 %v2692_v27  ;;  %v1193_v27 = vmul.f32 %v2446_v53, %v1191_v36 }
 0x456   :  { %v2702_v62 = vpop.eup %2701  ;;  %1098 = vmatpush.msrb.mxu0 %v2690_v56  ;;  %v1168_v56 = vmul.f32 %v1166_v34, %v3195_v37 }
 0x457   :  { %v2704_v63 = vpop.eup %2703  ;;  %1119 = vmatpush.msrb.mxu1 %v2698_v59 }
 0x458   :  { %1099 = vmatpush.msrb.mxu0 %v2700_v61 }
 0x459   :  { %1120 = vmatpush.msrb.mxu1 %v2702_v62 }
 0x45a   :  { %2439 = vmatmul.msk.f32.vlgmr.msrb.gmra.mxu1 %vm230_vm2, %v3010_v60  ;;  %1100 = vmatpush.msrb.mxu0 %v2704_v63 }
 0x45b   :  { %2438 = vmatmul.msk.f32.vlgmr.msrb.gmra.mxu0 %vm230_vm2, %v3010_v60 }
 0x45e   :  { %v1028_v2 = vpop.f32.mrf.mxu2  ;;  %v1057_v6 = vpop.f32.mrf.mxu3 }
 0x45f   :  { %v1029_v24 = vadd.f32 %v1028_v2, %v919_v48  ;;  %v1058_v25 = vadd.f32 %v1057_v6, %v919_v48  ;;  %v3279_v48 = vld [vmem:[%s3566_s4 + $0x10] sm:$0xff] }
 0x466   :  { %v1031_v7 = vpop.f32.mrf.mxu2  ;;  %v1060_v8 = vpop.f32.mrf.mxu3 }
 0x467   :  { %v1032_v22 = vadd.f32 %v1031_v7, %v924_v47  ;;  %v1061_v23 = vadd.f32 %v1060_v8, %v924_v47  ;;  %v3273_v47 = vld [vmem:[%s3563_s1] sm:$0xff] }
 0x46e   :  { %v1034_v15 = vpop.f32.mrf.mxu2  ;;  %v1063_v16 = vpop.f32.mrf.mxu3 }
 0x46f   :  { %v1035_v18 = vadd.f32 %v1034_v15, %v929_v43  ;;  %v1064_v21 = vadd.f32 %v1063_v16, %v929_v43 }
 0x476   :  { %v1037_v1 = vpop.f32.mrf.mxu2  ;;  %v1066_v17 = vpop.f32.mrf.mxu3 }
 0x477   :  { %v1038_v19 = vadd.f32 %v1037_v1, %v934_v42  ;;  %v1067_v20 = vadd.f32 %v1066_v17, %v934_v42 }
 0x479   :  { %2705 = vtanh.f32 %v1038_v19 }
 0x47a   :  { %2707 = vtanh.f32 %v1067_v20 }
 0x47b   :  { %2709 = vtanh.f32 %v1035_v18 }
 0x47c   :  { %2711 = vtanh.f32 %v1064_v21 }
 0x47d   :  { %2713 = vtanh.f32 %v1032_v22 }
 0x47e   :  { %2715 = vtanh.f32 %v1061_v23 }
 0x47f   :  { %v2706_v26 = vpop.eup %2705  ;;  %2717 = vtanh.f32 %v1029_v24 }
 0x480   :  { %v2708_v28 = vpop.eup %2707  ;;  %2719 = vtanh.f32 %v1058_v25  ;;  %1137 = vmatpush.msrb.mxu2 %v2706_v26 }
 0x481   :  { %v2710_v30 = vpop.eup %2709  ;;  %1157 = vmatpush.msrb.mxu3 %v2708_v28 }
 0x482   :  { %v2712_v31 = vpop.eup %2711  ;;  %1138 = vmatpush.msrb.mxu2 %v2710_v30 }
 0x483   :  { %v2714_v32 = vpop.eup %2713  ;;  %1158 = vmatpush.msrb.mxu3 %v2712_v31 }
 0x484   :  { %v2716_v4 = vpop.eup %2715  ;;  %1139 = vmatpush.msrb.mxu2 %v2714_v32 }
 0x485   :  { %v2718_v11 = vpop.eup %2717  ;;  %1159 = vmatpush.msrb.mxu3 %v2716_v4 }
 0x486   :  { %v2720_v54 = vpop.eup %2719  ;;  %1140 = vmatpush.msrb.mxu2 %v2718_v11 }
 0x487   :  { %1160 = vmatpush.msrb.mxu3 %v2720_v54  ;;  %2440 = vmatmul.msk.f32.vlgmr.msrb.gmra.mxu2 %vm230_vm2, %v3010_v60 }
 0x488   :  { %2441 = vmatmul.msk.f32.vlgmr.msrb.gmra.mxu3 %vm230_vm2, %v3010_v60  ;;  %v1167_v60 = vmul.f32 %v1166_v34, %v3165_v29  ;;  %v2873_v29 = vmov 4  }
 0x489   :  { %2582 = vset.pattern.permute.xlu1 %v2873_v29  ;;  %2581 = vset.pattern.permute.xlu0 %v2873_v29 }
 0x48a   :  { %1212 = vperm.xlu1 %2582, %v3252_v12   ;;  %2583 = vset.pattern.permute.xlu2 %v2873_v29 }
 0x48b   :  { %1217 = vperm.xlu0 %2581, %v3258_v45   ;;  %1207 = vperm.xlu2 %2583, %v3297_v13  }
 0x492   :  { %1202 = vperm.xlu1 %2582, %v3273_v47  }
 0x4d7   :  { %v1122_v3 = vpop.f32.mrf.mxu1 }
 0x4d8   :  { %v1172_v10 = vmul.f32 %v1170_v0, %v1122_v3  ;;  %v1102_v33 = vpop.f32.mrf.mxu0 }
 0x4d9   :  { %v1171_v38 = vmul.f32 %v1170_v0, %v1102_v33 }
 0x4da   :  { %v1179_v39 = vrot.slane %v1172_v10, 4  ;;  %v3329_v10 = vld [vmem:[%s3567_s5] sm:$0xf]  ;;  %s2472_s5 = sld [smem:[#allocation2 + $0xc]] }
 0x4dc   :  { %v1181_v5 = vsel %vm89_vm0, %v1171_v38, %v1179_v39 }
 0x4dd   :  { %v1185_v40 = vsub.f32 %v1167_v60, %v1181_v5 }
 0x4df   :  { %v3235_v41 = vadd.f32 %v1192_v9, %v1185_v40 }
 0x4e1   :  { %1222 = vst [vmem:[#allocation1] ss:$2 sm:$0xff] %v3235_v41 }
 0x4e5   :  { %v1208_v18 = vpop.permute.xlu2 %1207 }
 0x4e8   :  { %v1225_v42 = vld.sshfl [vmem:[#allocation1] sm:$0xff pattern:$0x75316420]  ;;  %v1226_v43 = vld.sshfl [vmem:[#allocation1 + $0x8] sm:$0xff pattern:$0x75316420] }
 0x4e9   :  { %2447 = vmatpush.msk.msra.mxu0 %vm89_vm0, %v1225_v42  ;;  %2452 = vmatpush.msk.msra.mxu1 %vm89_vm0, %v1226_v43 }
 0x4ea   :  { %2453 = vmatmul.msk.f32.vlgmr.msra.gmra.mxu1 %vm76_vm1, %v3243_v44  ;;  %2448 = vmatmul.msk.f32.vlgmr.msra.gmra.mxu0 %vm76_vm1, %v3243_v44 }
 0x4f2   :  { %2454 = vmatmul.msk.f32.gmra.mxu1 %vm76_vm1, %v3264_v46  ;;  %2449 = vmatmul.msk.f32.gmra.mxu0 %vm76_vm1, %v3264_v46 }
 0x4fa   :  { %2455 = vmatmul.msk.f32.gmra.mxu1 %vm76_vm1, %v3279_v48  ;;  %2450 = vmatmul.msk.f32.gmra.mxu0 %vm76_vm1, %v3279_v48 }
 0x4fc   :  { %v1213_v7 = vpop.permute.xlu1 %1212 }
 0x4fd   :  { %v1218_v17 = vpop.permute.xlu0 %1217 }
 0x502   :  { %2456 = vmatmul.msk.f32.gmra.mxu1 %vm76_vm1, %v3288_v49  ;;  %2451 = vmatmul.msk.f32.gmra.mxu0 %vm76_vm1, %v3288_v49 }
 0x504   :  { %v1203_v19 = vpop.permute.xlu1 %1202 }
 0x50a   :  { %v1142_v50 = vpop.f32.mrf.mxu2 }
 0x50b   :  { %v1162_v51 = vpop.f32.mrf.mxu3  ;;  %v1173_v14 = vmul.f32 %v1170_v0, %v1142_v50 }
 0x50c   :  { %v1174_v52 = vmul.f32 %v1170_v0, %v1162_v51 }
 0x50e   :  { %v1180_v55 = vrot.slane %v1174_v52, 4 }
 0x510   :  { %v1182_v57 = vsel %vm89_vm0, %v1173_v14, %v1180_v55 }
 0x511   :  { %v1186_v58 = vsub.f32 %v1168_v56, %v1182_v57 }
 0x513   :  { %v3305_v59 = vadd.f32 %v1193_v27, %v1186_v58 }
 0x515   :  { %1224 = vst [vmem:[#allocation1 + $0x10] ss:$2 sm:$0xff] %v3305_v59 }
 0x51c   :  { %v1227_v61 = vld.sshfl [vmem:[#allocation1 + $0x10] sm:$0xff pattern:$0x75316420]  ;;  %v1228_v62 = vld.sshfl [vmem:[#allocation1 + $0x18] sm:$0xff pattern:$0x75316420] }
 0x51d   :  { %2457 = vmatpush.msk.msra.mxu2 %vm89_vm0, %v1227_v61  ;;  %2462 = vmatpush.msk.msra.mxu3 %vm89_vm0, %v1228_v62  ;;  %v1454_v62 = vstv %s2472_s5 }
 0x51e   :  { %2458 = vmatmul.msk.f32.vlgmr.msra.gmra.mxu2 %vm76_vm1, %v3243_v44  ;;  %2463 = vmatmul.msk.f32.vlgmr.msra.gmra.mxu3 %vm76_vm1, %v3243_v44 }
 0x526   :  { %2459 = vmatmul.msk.f32.gmra.mxu2 %vm76_vm1, %v3264_v46  ;;  %2464 = vmatmul.msk.f32.gmra.mxu3 %vm76_vm1, %v3264_v46 }
 0x52e   :  { %2460 = vmatmul.msk.f32.gmra.mxu2 %vm76_vm1, %v3279_v48  ;;  %2465 = vmatmul.msk.f32.gmra.mxu3 %vm76_vm1, %v3279_v48 }
 0x536   :  { %2461 = vmatmul.msk.f32.gmra.mxu2 %vm76_vm1, %v3288_v49  ;;  %2466 = vmatmul.msk.f32.gmra.mxu3 %vm76_vm1, %v3288_v49 }
 0x567   :  { %v1283_v37 = vpop.f32.mrf.mxu1  ;;  %v1254_v63 = vpop.f32.mrf.mxu0 }
 0x568   :  { %v1284_v26 = vadd.f32 %v1283_v37, %v1203_v19  ;;  %v1255_v28 = vadd.f32 %v1254_v63, %v1203_v19 }
 0x56f   :  { %v1286_v2 = vpop.f32.mrf.mxu1  ;;  %v1257_v6 = vpop.f32.mrf.mxu0 }
 0x570   :  { %v1287_v24 = vadd.f32 %v1286_v2, %v1208_v18  ;;  %v1258_v25 = vadd.f32 %v1257_v6, %v1208_v18  ;;  %v1450_v6 = vstv %s3339_s13 }
 0x577   :  { %v1289_v8 = vpop.f32.mrf.mxu1  ;;  %v1260_v15 = vpop.f32.mrf.mxu0 }
 0x578   :  { %v1261_v16 = vadd.f32 %v1260_v15, %v1213_v7  ;;  %v1290_v1 = vadd.f32 %v1289_v8, %v1213_v7  ;;  %v1475_v8 = vstv %s3341_s14 }
 0x57a   :  { %2721 = vtanh.f32 %v1261_v16 }
 0x57b   :  { %2723 = vtanh.f32 %v1290_v1  ;;  %v1451_v1 = vmul.f32 %v1450_v6, %v3235_v41 }
 0x57f   :  { %v1292_v20 = vpop.f32.mrf.mxu1  ;;  %v1263_v21 = vpop.f32.mrf.mxu0 }
 0x580   :  { %v1293_v22 = vadd.f32 %v1292_v20, %v1218_v17  ;;  %v1264_v23 = vadd.f32 %v1263_v21, %v1218_v17  ;;  %v2722_v30 = vpop.eup %2721  ;;  %v2874_v21 = vmov 5  }
 0x581   :  { %v2724_v31 = vpop.eup %2723  ;;  %2585 = vset.pattern.permute.xlu0 %v2874_v21  ;;  %2586 = vset.pattern.permute.xlu1 %v2874_v21 }
 0x582   :  { %2725 = vtanh.f32 %v1293_v22  ;;  %1496 = vperm.xlu0 %2585, %v3252_v12   ;;  %1491 = vperm.xlu1 %2586, %v3297_v13  }
 0x583   :  { %2727 = vtanh.f32 %v1264_v23  ;;  %2584 = vset.pattern.permute.xlu2 %v2874_v21 }
 0x584   :  { %2729 = vtanh.f32 %v1287_v24  ;;  %1501 = vperm.xlu2 %2584, %v3258_v45  }
 0x585   :  { %2731 = vtanh.f32 %v1258_v25 }
 0x586   :  { %2733 = vtanh.f32 %v1284_v26 }
 0x587   :  { %2735 = vtanh.f32 %v1255_v28  ;;  %v2475_v28 = vld [vmem:[%s3565_s3 + $0x48] sm:$0xff] }
 0x588   :  { %v2726_v32 = vpop.eup %2725 }
 0x589   :  { %v2728_v4 = vpop.eup %2727  ;;  %1401 = vmatpush.msrb.mxu1 %v2726_v32  ;;  %v1477_v32 = vmul.f32 %v2475_v28, %v1475_v8 }
 0x58a   :  { %v2730_v11 = vpop.eup %2729  ;;  %1381 = vmatpush.msrb.mxu0 %v2728_v4 }
 0x58b   :  { %v2732_v54 = vpop.eup %2731  ;;  %1402 = vmatpush.msrb.mxu1 %v2724_v31  ;;  %v1452_v31 = vmul.f32 %v1450_v6, %v3305_v59 }
 0x58c   :  { %v2734_v0 = vpop.eup %2733  ;;  %1382 = vmatpush.msrb.mxu0 %v2722_v30  ;;  %1486 = vperm.xlu2 %2584, %v3273_v47  }
 0x58d   :  { %v2736_v3 = vpop.eup %2735  ;;  %1403 = vmatpush.msrb.mxu1 %v2730_v11 }
 0x58e   :  { %1383 = vmatpush.msrb.mxu0 %v2732_v54 }
 0x58f   :  { %1404 = vmatpush.msrb.mxu1 %v2734_v0  ;;  %v1734_v0 = vstv %s3378_s19 }
 0x590   :  { %2468 = vmatmul.msk.f32.vlgmr.msrb.gmra.mxu1 %vm230_vm2, %v3329_v10  ;;  %1384 = vmatpush.msrb.mxu0 %v2736_v3 }
 0x591   :  { %2467 = vmatmul.msk.f32.vlgmr.msrb.gmra.mxu0 %vm230_vm2, %v3329_v10 }
 0x5a1   :  { %v1312_v33 = vpop.f32.mrf.mxu2  ;;  %v1341_v34 = vpop.f32.mrf.mxu3 }
 0x5a2   :  { %v1313_v51 = vadd.f32 %v1312_v33, %v1203_v19  ;;  %v1342_v52 = vadd.f32 %v1341_v34, %v1203_v19 }
 0x5a9   :  { %v1315_v35 = vpop.f32.mrf.mxu2  ;;  %v1344_v36 = vpop.f32.mrf.mxu3 }
 0x5aa   :  { %v1316_v29 = vadd.f32 %v1315_v35, %v1208_v18  ;;  %v1345_v50 = vadd.f32 %v1344_v36, %v1208_v18 }
 0x5b1   :  { %v1318_v38 = vpop.f32.mrf.mxu2  ;;  %v1347_v39 = vpop.f32.mrf.mxu3 }
 0x5b2   :  { %v1319_v5 = vadd.f32 %v1318_v38, %v1213_v7  ;;  %v1348_v43 = vadd.f32 %v1347_v39, %v1213_v7  ;;  %v2474_v7 = vld [vmem:[%s3565_s3 + $0x40] sm:$0xff] }
 0x5b9   :  { %v1321_v60 = vpop.f32.mrf.mxu2  ;;  %v1350_v9 = vpop.f32.mrf.mxu3 }
 0x5ba   :  { %v1322_v40 = vadd.f32 %v1321_v60, %v1218_v17  ;;  %v1351_v42 = vadd.f32 %v1350_v9, %v1218_v17  ;;  %v1476_v17 = vmul.f32 %v2474_v7, %v1475_v8 }
 0x5bc   :  { %2737 = vtanh.f32 %v1322_v40 }
 0x5bd   :  { %2739 = vtanh.f32 %v1351_v42 }
 0x5be   :  { %2741 = vtanh.f32 %v1319_v5 }
 0x5bf   :  { %2743 = vtanh.f32 %v1348_v43 }
 0x5c0   :  { %2745 = vtanh.f32 %v1316_v29 }
 0x5c1   :  { %2747 = vtanh.f32 %v1345_v50 }
 0x5c2   :  { %v2738_v14 = vpop.eup %2737  ;;  %2749 = vtanh.f32 %v1313_v51 }
 0x5c3   :  { %v2740_v53 = vpop.eup %2739  ;;  %2751 = vtanh.f32 %v1342_v52  ;;  %1421 = vmatpush.msrb.mxu2 %v2738_v14 }
 0x5c4   :  { %v2742_v55 = vpop.eup %2741  ;;  %1441 = vmatpush.msrb.mxu3 %v2740_v53 }
 0x5c5   :  { %v2744_v56 = vpop.eup %2743  ;;  %1422 = vmatpush.msrb.mxu2 %v2742_v55 }
 0x5c6   :  { %v2746_v27 = vpop.eup %2745  ;;  %1442 = vmatpush.msrb.mxu3 %v2744_v56 }
 0x5c7   :  { %v2748_v57 = vpop.eup %2747  ;;  %1423 = vmatpush.msrb.mxu2 %v2746_v27 }
 0x5c8   :  { %v2750_v58 = vpop.eup %2749  ;;  %1443 = vmatpush.msrb.mxu3 %v2748_v57 }
 0x5c9   :  { %v2752_v61 = vpop.eup %2751  ;;  %1424 = vmatpush.msrb.mxu2 %v2750_v58 }
 0x5ca   :  { %1444 = vmatpush.msrb.mxu3 %v2752_v61  ;;  %2469 = vmatmul.msk.f32.vlgmr.msrb.gmra.mxu2 %vm230_vm2, %v3329_v10 }
 0x5cb   :  { %2470 = vmatmul.msk.f32.vlgmr.msrb.gmra.mxu3 %vm230_vm2, %v3329_v10 }
 0x5de   :  { %v1502_v39 = vpop.permute.xlu2 %1501 }
 0x5e6   :  { %v1487_v29 = vpop.permute.xlu2 %1486 }
 0x5f4   :  { %v1497_v5 = vpop.permute.xlu0 %1496  ;;  %v1492_v43 = vpop.permute.xlu1 %1491 }
 0x60d   :  { %v1406_v37 = vpop.f32.mrf.mxu1 }
 0x60e   :  { %v1456_v63 = vmul.f32 %v1454_v62, %v1406_v37  ;;  %v1386_v2 = vpop.f32.mrf.mxu0 }
 0x60f   :  { %v1455_v15 = vmul.f32 %v1454_v62, %v1386_v2 }
 0x610   :  { %v1463_v16 = vrot.slane %v1456_v63, 4 }
 0x612   :  { %v1465_v18 = vsel %vm89_vm0, %v1455_v15, %v1463_v16 }
 0x613   :  { %v1469_v19 = vsub.f32 %v1451_v1, %v1465_v18 }
 0x615   :  { %v3350_v20 = vadd.f32 %v1476_v17, %v1469_v19 }
 0x617   :  { %1506 = vst [vmem:[#allocation1] ss:$2 sm:$0xff] %v3350_v20 }
 0x61e   :  { %v1509_v22 = vld.sshfl [vmem:[#allocation1] sm:$0xff pattern:$0x75316420]  ;;  %v1510_v41 = vld.sshfl [vmem:[#allocation1 + $0x8] sm:$0xff pattern:$0x75316420] }
 0x61f   :  { %2476 = vmatpush.msk.msra.mxu0 %vm89_vm0, %v1509_v22  ;;  %2481 = vmatpush.msk.msra.mxu1 %vm89_vm0, %v1510_v41 }
 0x620   :  { %2482 = vmatmul.msk.f32.vlgmr.msra.gmra.mxu1 %vm76_vm1, %v3243_v44  ;;  %2477 = vmatmul.msk.f32.vlgmr.msra.gmra.mxu0 %vm76_vm1, %v3243_v44 }
 0x628   :  { %2483 = vmatmul.msk.f32.gmra.mxu1 %vm76_vm1, %v3264_v46  ;;  %2478 = vmatmul.msk.f32.gmra.mxu0 %vm76_vm1, %v3264_v46 }
 0x630   :  { %2484 = vmatmul.msk.f32.gmra.mxu1 %vm76_vm1, %v3279_v48  ;;  %2479 = vmatmul.msk.f32.gmra.mxu0 %vm76_vm1, %v3279_v48 }
 0x638   :  { %2485 = vmatmul.msk.f32.gmra.mxu1 %vm76_vm1, %v3288_v49  ;;  %2480 = vmatmul.msk.f32.gmra.mxu0 %vm76_vm1, %v3288_v49 }
 0x64d   :  { %v1426_v23 = vpop.f32.mrf.mxu2 }
 0x64e   :  { %v1446_v24 = vpop.f32.mrf.mxu3  ;;  %v1457_v26 = vmul.f32 %v1454_v62, %v1426_v23 }
 0x64f   :  { %v1458_v25 = vmul.f32 %v1454_v62, %v1446_v24 }
 0x651   :  { %v1464_v30 = vrot.slane %v1458_v25, 4 }
 0x653   :  { %v1466_v4 = vsel %vm89_vm0, %v1457_v26, %v1464_v30 }
 0x654   :  { %v1470_v11 = vsub.f32 %v1452_v31, %v1466_v4 }
 0x656   :  { %v1479_v54 = vadd.f32 %v1477_v32, %v1470_v11 }
 0x658   :  { %1508 = vst [vmem:[#allocation1 + $0x10] ss:$2 sm:$0xff] %v1479_v54  ;;  %v3385_v3 = vmul.f32 %v1734_v0, %v1479_v54 }
 0x65f   :  { %v1511_v33 = vld.sshfl [vmem:[#allocation1 + $0x10] sm:$0xff pattern:$0x75316420]  ;;  %v1512_v34 = vld.sshfl [vmem:[#allocation1 + $0x18] sm:$0xff pattern:$0x75316420] }
 0x660   :  { %2486 = vmatpush.msk.msra.mxu2 %vm89_vm0, %v1511_v33  ;;  %2491 = vmatpush.msk.msra.mxu3 %vm89_vm0, %v1512_v34 }
 0x661   :  { %2487 = vmatmul.msk.f32.vlgmr.msra.gmra.mxu2 %vm76_vm1, %v3243_v44  ;;  %2492 = vmatmul.msk.f32.vlgmr.msra.gmra.mxu3 %vm76_vm1, %v3243_v44 }
 0x669   :  { %2488 = vmatmul.msk.f32.gmra.mxu2 %vm76_vm1, %v3264_v46  ;;  %2493 = vmatmul.msk.f32.gmra.mxu3 %vm76_vm1, %v3264_v46 }
 0x671   :  { %2489 = vmatmul.msk.f32.gmra.mxu2 %vm76_vm1, %v3279_v48  ;;  %2494 = vmatmul.msk.f32.gmra.mxu3 %vm76_vm1, %v3279_v48 }
 0x679   :  { %2490 = vmatmul.msk.f32.gmra.mxu2 %vm76_vm1, %v3288_v49  ;;  %2495 = vmatmul.msk.f32.gmra.mxu3 %vm76_vm1, %v3288_v49 }
 0x69d   :  { %v1567_v59 = vpop.f32.mrf.mxu1  ;;  %v1538_v35 = vpop.f32.mrf.mxu0 }
 0x69e   :  { %v1568_v56 = vadd.f32 %v1567_v59, %v1487_v29  ;;  %v1539_v27 = vadd.f32 %v1538_v35, %v1487_v29  ;;  %v1738_v59 = vstv %s2501_s20 }
 0x6a5   :  { %v1570_v36 = vpop.f32.mrf.mxu1  ;;  %v1541_v38 = vpop.f32.mrf.mxu0 }
 0x6a6   :  { %v1571_v53 = vadd.f32 %v1570_v36, %v1492_v43  ;;  %v1542_v55 = vadd.f32 %v1541_v38, %v1492_v43 }
 0x6ad   :  { %v1573_v60 = vpop.f32.mrf.mxu1  ;;  %v1544_v9 = vpop.f32.mrf.mxu0 }
 0x6ae   :  { %v1545_v40 = vadd.f32 %v1544_v9, %v1497_v5  ;;  %v1574_v42 = vadd.f32 %v1573_v60, %v1497_v5  ;;  %v1759_v60 = vstv %s3413_s21 }
 0x6b0   :  { %2753 = vtanh.f32 %v1545_v40  ;;  %v1735_v40 = vmul.f32 %v1734_v0, %v3350_v20 }
 0x6b1   :  { %2755 = vtanh.f32 %v1574_v42 }
 0x6b5   :  { %v1576_v50 = vpop.f32.mrf.mxu1  ;;  %v1547_v51 = vpop.f32.mrf.mxu0 }
 0x6b6   :  { %v1577_v52 = vadd.f32 %v1576_v50, %v1502_v39  ;;  %v1548_v14 = vadd.f32 %v1547_v51, %v1502_v39  ;;  %v2754_v57 = vpop.eup %2753  ;;  %v2875_v51 = vmov 6  }
 0x6b7   :  { %v2756_v58 = vpop.eup %2755  ;;  %2587 = vset.pattern.permute.xlu1 %v2875_v51  ;;  %2589 = vset.pattern.permute.xlu0 %v2875_v51 }
 0x6b8   :  { %2757 = vtanh.f32 %v1577_v52  ;;  %1785 = vperm.xlu1 %2587, %v3258_v45   ;;  %1775 = vperm.xlu0 %2589, %v3297_v13  }
 0x6b9   :  { %2759 = vtanh.f32 %v1548_v14  ;;  %2588 = vset.pattern.permute.xlu2 %v2875_v51 }
 0x6ba   :  { %2761 = vtanh.f32 %v1571_v53  ;;  %1780 = vperm.xlu2 %2588, %v3252_v12  }
 0x6bb   :  { %2763 = vtanh.f32 %v1542_v55 }
 0x6bc   :  { %2765 = vtanh.f32 %v1568_v56  ;;  %v2504_v56 = vld [vmem:[%s3565_s3 + $0x58] sm:$0xff] }
 0x6bd   :  { %2767 = vtanh.f32 %v1539_v27 }
 0x6be   :  { %v2758_v61 = vpop.eup %2757 }
 0x6bf   :  { %v2760_v62 = vpop.eup %2759  ;;  %1685 = vmatpush.msrb.mxu1 %v2758_v61 }
 0x6c0   :  { %v2762_v37 = vpop.eup %2761  ;;  %1665 = vmatpush.msrb.mxu0 %v2760_v62  ;;  %1770 = vperm.xlu1 %2587, %v3273_v47  }
 0x6c1   :  { %v2764_v63 = vpop.eup %2763  ;;  %1686 = vmatpush.msrb.mxu1 %v2756_v58 }
 0x6c2   :  { %v2766_v2 = vpop.eup %2765  ;;  %1666 = vmatpush.msrb.mxu0 %v2754_v57  ;;  %v1761_v57 = vmul.f32 %v2504_v56, %v1759_v60 }
 0x6c3   :  { %v2768_v6 = vpop.eup %2767  ;;  %1687 = vmatpush.msrb.mxu1 %v2762_v37 }
 0x6c4   :  { %1667 = vmatpush.msrb.mxu0 %v2764_v63 }
 0x6c5   :  { %1688 = vmatpush.msrb.mxu1 %v2766_v2 }
 0x6c6   :  { %2497 = vmatmul.msk.f32.vlgmr.msrb.gmra.mxu1 %vm230_vm2, %v3329_v10  ;;  %1668 = vmatpush.msrb.mxu0 %v2768_v6 }
 0x6c7   :  { %2496 = vmatmul.msk.f32.vlgmr.msrb.gmra.mxu0 %vm230_vm2, %v3329_v10 }
 0x6e4   :  { %v1596_v7 = vpop.f32.mrf.mxu2  ;;  %v1625_v8 = vpop.f32.mrf.mxu3 }
 0x6e5   :  { %v1597_v26 = vadd.f32 %v1596_v7, %v1487_v29  ;;  %v1626_v28 = vadd.f32 %v1625_v8, %v1487_v29 }
 0x6ec   :  { %v1599_v15 = vpop.f32.mrf.mxu2  ;;  %v1628_v16 = vpop.f32.mrf.mxu3 }
 0x6ed   :  { %v1600_v24 = vadd.f32 %v1599_v15, %v1492_v43  ;;  %v1629_v25 = vadd.f32 %v1628_v16, %v1492_v43 }
 0x6f4   :  { %v1602_v1 = vpop.f32.mrf.mxu2  ;;  %v1631_v17 = vpop.f32.mrf.mxu3 }
 0x6f5   :  { %v1603_v21 = vadd.f32 %v1602_v1, %v1497_v5  ;;  %v1632_v23 = vadd.f32 %v1631_v17, %v1497_v5 }
 0x6fc   :  { %v1605_v18 = vpop.f32.mrf.mxu2  ;;  %v1634_v19 = vpop.f32.mrf.mxu3 }
 0x6fd   :  { %v1606_v22 = vadd.f32 %v1605_v18, %v1502_v39  ;;  %v1635_v41 = vadd.f32 %v1634_v19, %v1502_v39  ;;  %v2503_v39 = vld [vmem:[%s3565_s3 + $0x50] sm:$0xff] }
 0x6fe   :  { %v1760_v42 = vmul.f32 %v2503_v39, %v1759_v60 }
 0x6ff   :  { %2769 = vtanh.f32 %v1606_v22 }
 0x700   :  { %2771 = vtanh.f32 %v1635_v41 }
 0x701   :  { %2773 = vtanh.f32 %v1603_v21 }
 0x702   :  { %2775 = vtanh.f32 %v1632_v23 }
 0x703   :  { %2777 = vtanh.f32 %v1600_v24 }
 0x704   :  { %2779 = vtanh.f32 %v1629_v25 }
 0x705   :  { %v2770_v30 = vpop.eup %2769  ;;  %2781 = vtanh.f32 %v1597_v26 }
 0x706   :  { %v2772_v31 = vpop.eup %2771  ;;  %2783 = vtanh.f32 %v1626_v28  ;;  %1705 = vmatpush.msrb.mxu2 %v2770_v30 }
 0x707   :  { %v2774_v32 = vpop.eup %2773  ;;  %1725 = vmatpush.msrb.mxu3 %v2772_v31 }
 0x708   :  { %v2776_v4 = vpop.eup %2775  ;;  %1706 = vmatpush.msrb.mxu2 %v2774_v32 }
 0x709   :  { %v2778_v11 = vpop.eup %2777  ;;  %1726 = vmatpush.msrb.mxu3 %v2776_v4 }
 0x70a   :  { %v2780_v54 = vpop.eup %2779  ;;  %1707 = vmatpush.msrb.mxu2 %v2778_v11 }
 0x70b   :  { %v2782_v33 = vpop.eup %2781  ;;  %1727 = vmatpush.msrb.mxu3 %v2780_v54 }
 0x70c   :  { %v2784_v34 = vpop.eup %2783  ;;  %1708 = vmatpush.msrb.mxu2 %v2782_v33 }
 0x70d   :  { %1728 = vmatpush.msrb.mxu3 %v2784_v34  ;;  %2498 = vmatmul.msk.f32.vlgmr.msrb.gmra.mxu2 %vm230_vm2, %v3329_v10 }
 0x70e   :  { %2499 = vmatmul.msk.f32.vlgmr.msrb.gmra.mxu3 %vm230_vm2, %v3329_v10 }
 0x714   :  { %v1781_v1 = vpop.permute.xlu2 %1780 }
 0x72a   :  { %v1786_v8 = vpop.permute.xlu1 %1785  ;;  %v1776_v19 = vpop.permute.xlu0 %1775 }
 0x732   :  { %v1771_v21 = vpop.permute.xlu1 %1770 }
 0x743   :  { %v1690_v35 = vpop.f32.mrf.mxu1 }
 0x744   :  { %v1740_v36 = vmul.f32 %v1738_v59, %v1690_v35  ;;  %v1670_v38 = vpop.f32.mrf.mxu0 }
 0x745   :  { %v1739_v9 = vmul.f32 %v1738_v59, %v1670_v38 }
 0x746   :  { %v1747_v5 = vrot.slane %v1740_v36, 4 }
 0x748   :  { %v1749_v43 = vsel %vm89_vm0, %v1739_v9, %v1747_v5 }
 0x749   :  { %v1753_v29 = vsub.f32 %v1735_v40, %v1749_v43 }
 0x74b   :  { %v3423_v50 = vadd.f32 %v1760_v42, %v1753_v29 }
 0x74d   :  { %1790 = vst [vmem:[#allocation1] ss:$2 sm:$0xff] %v3423_v50 }
 0x754   :  { %v1793_v52 = vld.sshfl [vmem:[#allocation1] sm:$0xff pattern:$0x75316420]  ;;  %v1794_v20 = vld.sshfl [vmem:[#allocation1 + $0x8] sm:$0xff pattern:$0x75316420] }
 0x755   :  { %2505 = vmatpush.msk.msra.mxu0 %vm89_vm0, %v1793_v52  ;;  %2510 = vmatpush.msk.msra.mxu1 %vm89_vm0, %v1794_v20 }
 0x756   :  { %2511 = vmatmul.msk.f32.vlgmr.msra.gmra.mxu1 %vm76_vm1, %v3243_v44  ;;  %2506 = vmatmul.msk.f32.vlgmr.msra.gmra.mxu0 %vm76_vm1, %v3243_v44 }
 0x75e   :  { %2512 = vmatmul.msk.f32.gmra.mxu1 %vm76_vm1, %v3264_v46  ;;  %2507 = vmatmul.msk.f32.gmra.mxu0 %vm76_vm1, %v3264_v46 }
 0x766   :  { %2513 = vmatmul.msk.f32.gmra.mxu1 %vm76_vm1, %v3279_v48  ;;  %2508 = vmatmul.msk.f32.gmra.mxu0 %vm76_vm1, %v3279_v48 }
 0x76e   :  { %2514 = vmatmul.msk.f32.gmra.mxu1 %vm76_vm1, %v3288_v49  ;;  %2509 = vmatmul.msk.f32.gmra.mxu0 %vm76_vm1, %v3288_v49 }
 0x790   :  { %v1710_v0 = vpop.f32.mrf.mxu2 }
 0x791   :  { %v1730_v14 = vpop.f32.mrf.mxu3  ;;  %v1741_v55 = vmul.f32 %v1738_v59, %v1710_v0 }
 0x792   :  { %v1742_v53 = vmul.f32 %v1738_v59, %v1730_v14 }
 0x794   :  { %v1748_v27 = vrot.slane %v1742_v53, 4 }
 0x796   :  { %v1750_v58 = vsel %vm89_vm0, %v1741_v55, %v1748_v27 }
 0x797   :  { %v1754_v61 = vsub.f32 %v3385_v3, %v1750_v58 }
 0x799   :  { %v3453_v62 = vadd.f32 %v1761_v57, %v1754_v61 }
 0x79b   :  { %1792 = vst [vmem:[#allocation1 + $0x10] ss:$2 sm:$0xff] %v3453_v62 }
 0x7a2   :  { %v1795_v37 = vld.sshfl [vmem:[#allocation1 + $0x10] sm:$0xff pattern:$0x75316420]  ;;  %v1796_v63 = vld.sshfl [vmem:[#allocation1 + $0x18] sm:$0xff pattern:$0x75316420] }
 0x7a3   :  { %2515 = vmatpush.msk.msra.mxu2 %vm89_vm0, %v1795_v37  ;;  %2520 = vmatpush.msk.msra.mxu3 %vm89_vm0, %v1796_v63  ;;  %v2022_v63 = vstv %s2530_s26 }
 0x7a4   :  { %2516 = vmatmul.msk.f32.vlgmr.msra.gmra.mxu2 %vm76_vm1, %v3243_v44  ;;  %2521 = vmatmul.msk.f32.vlgmr.msra.gmra.mxu3 %vm76_vm1, %v3243_v44 }
 0x7ac   :  { %2517 = vmatmul.msk.f32.gmra.mxu2 %vm76_vm1, %v3264_v46  ;;  %2522 = vmatmul.msk.f32.gmra.mxu3 %vm76_vm1, %v3264_v46 }
 0x7b4   :  { %2518 = vmatmul.msk.f32.gmra.mxu2 %vm76_vm1, %v3279_v48  ;;  %2523 = vmatmul.msk.f32.gmra.mxu3 %vm76_vm1, %v3279_v48 }
 0x7bc   :  { %2519 = vmatmul.msk.f32.gmra.mxu2 %vm76_vm1, %v3288_v49  ;;  %2524 = vmatmul.msk.f32.gmra.mxu3 %vm76_vm1, %v3288_v49 }
 0x7d3   :  { %v1851_v3 = vpop.f32.mrf.mxu1  ;;  %v1822_v2 = vpop.f32.mrf.mxu0 }
 0x7d4   :  { %v1852_v28 = vadd.f32 %v1851_v3, %v1771_v21  ;;  %v1823_v30 = vadd.f32 %v1822_v2, %v1771_v21 }
 0x7db   :  { %v1854_v6 = vpop.f32.mrf.mxu1  ;;  %v1825_v7 = vpop.f32.mrf.mxu0 }
 0x7dc   :  { %v1855_v25 = vadd.f32 %v1854_v6, %v1776_v19  ;;  %v1826_v26 = vadd.f32 %v1825_v7, %v1776_v19  ;;  %v2018_v7 = vstv %s3482_s27 }
 0x7e3   :  { %v1857_v15 = vpop.f32.mrf.mxu1  ;;  %v1828_v16 = vpop.f32.mrf.mxu0 }
 0x7e4   :  { %v1829_v17 = vadd.f32 %v1828_v16, %v1781_v1  ;;  %v1858_v18 = vadd.f32 %v1857_v15, %v1781_v1  ;;  %v2043_v15 = vstv %s3484_s28 }
 0x7e6   :  { %2785 = vtanh.f32 %v1829_v17  ;;  %v2019_v17 = vmul.f32 %v2018_v7, %v3423_v50 }
 0x7e7   :  { %2787 = vtanh.f32 %v1858_v18 }
 0x7eb   :  { %v1860_v22 = vpop.f32.mrf.mxu1  ;;  %v1831_v41 = vpop.f32.mrf.mxu0 }
 0x7ec   :  { %v1861_v23 = vadd.f32 %v1860_v22, %v1786_v8  ;;  %v1832_v24 = vadd.f32 %v1831_v41, %v1786_v8  ;;  %v2786_v31 = vpop.eup %2785  ;;  %v2876_v41 = vmov 7  }
 0x7ed   :  { %v2788_v32 = vpop.eup %2787  ;;  %2591 = vset.pattern.permute.xlu1 %v2876_v41  ;;  %2592 = vset.pattern.permute.xlu0 %v2876_v41 }
 0x7ee   :  { %2789 = vtanh.f32 %v1861_v23  ;;  %2064 = vperm.xlu1 %2591, %v3252_v12   ;;  %2054 = vperm.xlu0 %2592, %v3273_v47  }
 0x7ef   :  { %2791 = vtanh.f32 %v1832_v24  ;;  %2590 = vset.pattern.permute.xlu2 %v2876_v41  ;;  %v2533_v24 = vld [vmem:[%s3565_s3 + $0x68] sm:$0xff] }
 0x7f0   :  { %2793 = vtanh.f32 %v1855_v25  ;;  %2069 = vperm.xlu2 %2590, %v3258_v45  }
 0x7f1   :  { %2795 = vtanh.f32 %v1826_v26  ;;  %v2020_v26 = vmul.f32 %v2018_v7, %v3453_v62 }
 0x7f2   :  { %2797 = vtanh.f32 %v1852_v28  ;;  %v2045_v28 = vmul.f32 %v2533_v24, %v2043_v15 }
 0x7f3   :  { %2799 = vtanh.f32 %v1823_v30 }
 0x7f4   :  { %v2790_v4 = vpop.eup %2789 }
 0x7f5   :  { %v2792_v11 = vpop.eup %2791  ;;  %1969 = vmatpush.msrb.mxu1 %v2790_v4 }
 0x7f6   :  { %v2794_v54 = vpop.eup %2793  ;;  %1949 = vmatpush.msrb.mxu0 %v2792_v11 }
 0x7f7   :  { %v2796_v33 = vpop.eup %2795  ;;  %1970 = vmatpush.msrb.mxu1 %v2788_v32 }
 0x7f8   :  { %v2798_v34 = vpop.eup %2797  ;;  %1950 = vmatpush.msrb.mxu0 %v2786_v31  ;;  %2059 = vperm.xlu2 %2590, %v3297_v13  }
 0x7f9   :  { %v2800_v59 = vpop.eup %2799  ;;  %1971 = vmatpush.msrb.mxu1 %v2794_v54 }
 0x7fa   :  { %1951 = vmatpush.msrb.mxu0 %v2796_v33 }
 0x7fb   :  { %1972 = vmatpush.msrb.mxu1 %v2798_v34 }
 0x7fc   :  { %2526 = vmatmul.msk.f32.vlgmr.msrb.gmra.mxu1 %vm230_vm2, %v3329_v10  ;;  %1952 = vmatpush.msrb.mxu0 %v2800_v59 }
 0x7fd   :  { %2525 = vmatmul.msk.f32.vlgmr.msrb.gmra.mxu0 %vm230_vm2, %v3329_v10 }
 0x827   :  { %v1880_v35 = vpop.f32.mrf.mxu2  ;;  %v1909_v36 = vpop.f32.mrf.mxu3 }
 0x828   :  { %v1881_v0 = vadd.f32 %v1880_v35, %v1771_v21  ;;  %v1910_v14 = vadd.f32 %v1909_v36, %v1771_v21 }
 0x82f   :  { %v1883_v38 = vpop.f32.mrf.mxu2  ;;  %v1912_v39 = vpop.f32.mrf.mxu3 }
 0x830   :  { %v1884_v52 = vadd.f32 %v1883_v38, %v1776_v19  ;;  %v1913_v20 = vadd.f32 %v1912_v39, %v1776_v19 }
 0x837   :  { %v1886_v60 = vpop.f32.mrf.mxu2  ;;  %v1915_v9 = vpop.f32.mrf.mxu3 }
 0x838   :  { %v1887_v42 = vadd.f32 %v1886_v60, %v1781_v1  ;;  %v1916_v51 = vadd.f32 %v1915_v9, %v1781_v1 }
 0x83f   :  { %v1889_v5 = vpop.f32.mrf.mxu2  ;;  %v1918_v40 = vpop.f32.mrf.mxu3 }
 0x840   :  { %v1890_v43 = vadd.f32 %v1889_v5, %v1786_v8  ;;  %v1919_v29 = vadd.f32 %v1918_v40, %v1786_v8  ;;  %v2532_v8 = vld [vmem:[%s3565_s3 + $0x60] sm:$0xff]  ;;  %s2559_s3 = sld [smem:[#allocation2 + $0xf]] }
 0x841   :  { %v2044_v18 = vmul.f32 %v2532_v8, %v2043_v15 }
 0x842   :  { %2801 = vtanh.f32 %v1890_v43 }
 0x843   :  { %2803 = vtanh.f32 %v1919_v29 }
 0x844   :  { %2805 = vtanh.f32 %v1887_v42 }
 0x845   :  { %2807 = vtanh.f32 %v1916_v51 }
 0x846   :  { %2809 = vtanh.f32 %v1884_v52 }
 0x847   :  { %2811 = vtanh.f32 %v1913_v20 }
 0x848   :  { %v2802_v53 = vpop.eup %2801  ;;  %2813 = vtanh.f32 %v1881_v0 }
 0x849   :  { %v2804_v55 = vpop.eup %2803  ;;  %2815 = vtanh.f32 %v1910_v14  ;;  %1989 = vmatpush.msrb.mxu2 %v2802_v53 }
 0x84a   :  { %v2806_v56 = vpop.eup %2805  ;;  %2009 = vmatpush.msrb.mxu3 %v2804_v55  ;;  %v2070_v34 = vpop.permute.xlu2 %2069 }
 0x84b   :  { %v2808_v27 = vpop.eup %2807  ;;  %1990 = vmatpush.msrb.mxu2 %v2806_v56 }
 0x84c   :  { %v2810_v57 = vpop.eup %2809  ;;  %2010 = vmatpush.msrb.mxu3 %v2808_v27 }
 0x84d   :  { %v2812_v58 = vpop.eup %2811  ;;  %1991 = vmatpush.msrb.mxu2 %v2810_v57 }
 0x84e   :  { %v2814_v61 = vpop.eup %2813  ;;  %2011 = vmatpush.msrb.mxu3 %v2812_v58 }
 0x84f   :  { %v2816_v37 = vpop.eup %2815  ;;  %1992 = vmatpush.msrb.mxu2 %v2814_v61 }
 0x850   :  { %2012 = vmatpush.msrb.mxu3 %v2816_v37  ;;  %2527 = vmatmul.msk.f32.vlgmr.msrb.gmra.mxu2 %vm230_vm2, %v3329_v10 }
 0x851   :  { %2528 = vmatmul.msk.f32.vlgmr.msrb.gmra.mxu3 %vm230_vm2, %v3329_v10 }
 0x852   :  { %v2060_v39 = vpop.permute.xlu2 %2059 }
 0x860   :  { %v2055_v60 = vpop.permute.xlu0 %2054 }
 0x879   :  { %v1974_v3 = vpop.f32.mrf.mxu1 }
 0x87a   :  { %v2024_v2 = vmul.f32 %v2022_v63, %v1974_v3  ;;  %v1954_v6 = vpop.f32.mrf.mxu0 }
 0x87b   :  { %v2023_v16 = vmul.f32 %v2022_v63, %v1954_v6 }
 0x87c   :  { %v2031_v1 = vrot.slane %v2024_v2, 4 }
 0x87e   :  { %v2033_v19 = vsel %vm89_vm0, %v2023_v16, %v2031_v1 }
 0x87f   :  { %v2037_v21 = vsub.f32 %v2019_v17, %v2033_v19 }
 0x881   :  { %v3493_v22 = vadd.f32 %v2044_v18, %v2037_v21 }
 0x883   :  { %2074 = vst [vmem:[#allocation1] ss:$2 sm:$0xff] %v3493_v22 }
 0x88a   :  { %v2077_v23 = vld.sshfl [vmem:[#allocation1] sm:$0xff pattern:$0x75316420]  ;;  %v2078_v50 = vld.sshfl [vmem:[#allocation1 + $0x8] sm:$0xff pattern:$0x75316420] }
 0x88b   :  { %2534 = vmatpush.msk.msra.mxu0 %vm89_vm0, %v2077_v23  ;;  %2539 = vmatpush.msk.msra.mxu1 %vm89_vm0, %v2078_v50 }
 0x88c   :  { %2540 = vmatmul.msk.f32.vlgmr.msra.gmra.mxu1 %vm76_vm1, %v3243_v44  ;;  %2535 = vmatmul.msk.f32.vlgmr.msra.gmra.mxu0 %vm76_vm1, %v3243_v44 }
 0x894   :  { %2541 = vmatmul.msk.f32.gmra.mxu1 %vm76_vm1, %v3264_v46  ;;  %2536 = vmatmul.msk.f32.gmra.mxu0 %vm76_vm1, %v3264_v46 }
 0x89c   :  { %2542 = vmatmul.msk.f32.gmra.mxu1 %vm76_vm1, %v3279_v48  ;;  %2537 = vmatmul.msk.f32.gmra.mxu0 %vm76_vm1, %v3279_v48 }
 0x8a4   :  { %2543 = vmatmul.msk.f32.gmra.mxu1 %vm76_vm1, %v3288_v49  ;;  %2538 = vmatmul.msk.f32.gmra.mxu0 %vm76_vm1, %v3288_v49 }
 0x8d3   :  { %v1994_v12 = vpop.f32.mrf.mxu2 }
 0x8d4   :  { %v2014_v45 = vpop.f32.mrf.mxu3  ;;  %v2025_v13 = vmul.f32 %v2022_v63, %v1994_v12 }
 0x8d5   :  { %v2026_v47 = vmul.f32 %v2022_v63, %v2014_v45 }
 0x8d7   :  { %v2032_v25 = vrot.slane %v2026_v47, 4 }
 0x8d9   :  { %v2034_v30 = vsel %vm89_vm0, %v2025_v13, %v2032_v25  ;;  %v2306_v13 = vstv %s2559_s3 }
 0x8da   :  { %v2038_v31 = vsub.f32 %v2020_v26, %v2034_v30 }
 0x8dc   :  { %v3523_v32 = vadd.f32 %v2045_v28, %v2038_v31  ;;  %v2302_v28 = vstv %s2558_s2 }
 0x8de   :  { %2076 = vst [vmem:[#allocation1 + $0x10] ss:$2 sm:$0xff] %v3523_v32 }
 0x8e5   :  { %v2079_v4 = vld.sshfl [vmem:[#allocation1 + $0x10] sm:$0xff pattern:$0x75316420]  ;;  %v2080_v11 = vld.sshfl [vmem:[#allocation1 + $0x18] sm:$0xff pattern:$0x75316420] }
 0x8e6   :  { %2544 = vmatpush.msk.msra.mxu2 %vm89_vm0, %v2079_v4  ;;  %2549 = vmatpush.msk.msra.mxu3 %vm89_vm0, %v2080_v11  ;;  %v2303_v4 = vmul.f32 %v2302_v28, %v3493_v22 }
 0x8e7   :  { %2545 = vmatmul.msk.f32.vlgmr.msra.gmra.mxu2 %vm76_vm1, %v3243_v44  ;;  %2550 = vmatmul.msk.f32.vlgmr.msra.gmra.mxu3 %vm76_vm1, %v3243_v44 }
 0x8ef   :  { %2546 = vmatmul.msk.f32.gmra.mxu2 %vm76_vm1, %v3264_v46  ;;  %2551 = vmatmul.msk.f32.gmra.mxu3 %vm76_vm1, %v3264_v46  ;;  %v2065_v46 = vpop.permute.xlu1 %2064 }
 0x8f7   :  { %2547 = vmatmul.msk.f32.gmra.mxu2 %vm76_vm1, %v3279_v48  ;;  %2552 = vmatmul.msk.f32.gmra.mxu3 %vm76_vm1, %v3279_v48 }
 0x8ff   :  { %2548 = vmatmul.msk.f32.gmra.mxu2 %vm76_vm1, %v3288_v49  ;;  %2553 = vmatmul.msk.f32.gmra.mxu3 %vm76_vm1, %v3288_v49 }
 0x909   :  { %v2135_v62 = vpop.f32.mrf.mxu1  ;;  %v2106_v44 = vpop.f32.mrf.mxu0 }
 0x90a   :  { %v2136_v43 = vadd.f32 %v2135_v62, %v2055_v60  ;;  %v2107_v29 = vadd.f32 %v2106_v44, %v2055_v60 }
 0x911   :  { %v2138_v54 = vpop.f32.mrf.mxu1  ;;  %v2109_v33 = vpop.f32.mrf.mxu0 }
 0x912   :  { %v2139_v42 = vadd.f32 %v2138_v54, %v2060_v39  ;;  %v2110_v49 = vadd.f32 %v2109_v33, %v2060_v39 }
 0x919   :  { %v2141_v59 = vpop.f32.mrf.mxu1  ;;  %v2112_v35 = vpop.f32.mrf.mxu0 }
 0x91a   :  { %v2113_v36 = vadd.f32 %v2112_v35, %v2065_v46  ;;  %v2142_v38 = vadd.f32 %v2141_v59, %v2065_v46  ;;  %v2304_v35 = vmul.f32 %v2302_v28, %v3523_v32 }
 0x91c   :  { %2817 = vtanh.f32 %v2113_v36 }
 0x91d   :  { %2819 = vtanh.f32 %v2142_v38 }
 0x921   :  { %v2144_v9 = vpop.f32.mrf.mxu1  ;;  %v2115_v48 = vpop.f32.mrf.mxu0 }
 0x922   :  { %v2145_v5 = vadd.f32 %v2144_v9, %v2070_v34  ;;  %v2116_v40 = vadd.f32 %v2115_v48, %v2070_v34  ;;  %v2818_v51 = vpop.eup %2817 }
 0x923   :  { %v2820_v52 = vpop.eup %2819 }
 0x924   :  { %2821 = vtanh.f32 %v2145_v5 }
 0x925   :  { %2823 = vtanh.f32 %v2116_v40 }
 0x926   :  { %2825 = vtanh.f32 %v2139_v42 }
 0x927   :  { %2827 = vtanh.f32 %v2110_v49 }
 0x928   :  { %2829 = vtanh.f32 %v2136_v43 }
 0x929   :  { %2831 = vtanh.f32 %v2107_v29 }
 0x92a   :  { %v2822_v20 = vpop.eup %2821 }
 0x92b   :  { %v2824_v0 = vpop.eup %2823  ;;  %2253 = vmatpush.msrb.mxu1 %v2822_v20 }
 0x92c   :  { %v2826_v14 = vpop.eup %2825  ;;  %2233 = vmatpush.msrb.mxu0 %v2824_v0 }
 0x92d   :  { %v2828_v53 = vpop.eup %2827  ;;  %2254 = vmatpush.msrb.mxu1 %v2820_v52 }
 0x92e   :  { %v2830_v55 = vpop.eup %2829  ;;  %2234 = vmatpush.msrb.mxu0 %v2818_v51 }
 0x92f   :  { %v2832_v56 = vpop.eup %2831  ;;  %2255 = vmatpush.msrb.mxu1 %v2826_v14 }
 0x930   :  { %2235 = vmatpush.msrb.mxu0 %v2828_v53 }
 0x931   :  { %2256 = vmatpush.msrb.mxu1 %v2830_v55 }
 0x932   :  { %2555 = vmatmul.msk.f32.vlgmr.msrb.gmra.mxu1 %vm230_vm2, %v3329_v10  ;;  %2236 = vmatpush.msrb.mxu0 %v2832_v56 }
 0x933   :  { %2554 = vmatmul.msk.f32.vlgmr.msrb.gmra.mxu0 %vm230_vm2, %v3329_v10 }
 0x96a   :  { %v2164_v27 = vpop.f32.mrf.mxu2  ;;  %v2193_v57 = vpop.f32.mrf.mxu3 }
 0x96b   :  { %v2165_v17 = vadd.f32 %v2164_v27, %v2055_v60  ;;  %v2194_v18 = vadd.f32 %v2193_v57, %v2055_v60 }
 0x972   :  { %v2167_v58 = vpop.f32.mrf.mxu2  ;;  %v2196_v61 = vpop.f32.mrf.mxu3 }
 0x973   :  { %v2168_v16 = vadd.f32 %v2167_v58, %v2060_v39  ;;  %v2197_v1 = vadd.f32 %v2196_v61, %v2060_v39 }
 0x97a   :  { %v2170_v37 = vpop.f32.mrf.mxu2  ;;  %v2199_v63 = vpop.f32.mrf.mxu3 }
 0x97b   :  { %v2171_v6 = vadd.f32 %v2170_v37, %v2065_v46  ;;  %v2200_v15 = vadd.f32 %v2199_v63, %v2065_v46 }
 0x982   :  { %v2173_v3 = vpop.f32.mrf.mxu2  ;;  %v2202_v2 = vpop.f32.mrf.mxu3 }
 0x983   :  { %v2174_v7 = vadd.f32 %v2173_v3, %v2070_v34  ;;  %v2203_v8 = vadd.f32 %v2202_v2, %v2070_v34 }
 0x985   :  { %2833 = vtanh.f32 %v2174_v7 }
 0x986   :  { %2835 = vtanh.f32 %v2203_v8 }
 0x987   :  { %2837 = vtanh.f32 %v2171_v6 }
 0x988   :  { %2839 = vtanh.f32 %v2200_v15 }
 0x989   :  { %2841 = vtanh.f32 %v2168_v16 }
 0x98a   :  { %2843 = vtanh.f32 %v2197_v1 }
 0x98b   :  { %v2834_v19 = vpop.eup %2833  ;;  %2845 = vtanh.f32 %v2165_v17 }
 0x98c   :  { %v2836_v21 = vpop.eup %2835  ;;  %2847 = vtanh.f32 %v2194_v18  ;;  %2273 = vmatpush.msrb.mxu2 %v2834_v19 }
 0x98d   :  { %v2838_v41 = vpop.eup %2837  ;;  %2293 = vmatpush.msrb.mxu3 %v2836_v21 }
 0x98e   :  { %v2840_v23 = vpop.eup %2839  ;;  %2274 = vmatpush.msrb.mxu2 %v2838_v41 }
 0x98f   :  { %v2842_v50 = vpop.eup %2841  ;;  %2294 = vmatpush.msrb.mxu3 %v2840_v23 }
 0x990   :  { %v2844_v12 = vpop.eup %2843  ;;  %2275 = vmatpush.msrb.mxu2 %v2842_v50 }
 0x991   :  { %v2846_v45 = vpop.eup %2845  ;;  %2295 = vmatpush.msrb.mxu3 %v2844_v12 }
 0x992   :  { %v2848_v47 = vpop.eup %2847  ;;  %2276 = vmatpush.msrb.mxu2 %v2846_v45 }
 0x993   :  { %2296 = vmatpush.msrb.mxu3 %v2848_v47  ;;  %2556 = vmatmul.msk.f32.vlgmr.msrb.gmra.mxu2 %vm230_vm2, %v3329_v10 }
 0x994   :  { %2557 = vmatmul.msk.f32.vlgmr.msrb.gmra.mxu3 %vm230_vm2, %v3329_v10 }
 0x9af   :  { %v2258_v24 = vpop.f32.mrf.mxu1 }
 0x9b0   :  { %v2308_v25 = vmul.f32 %v2306_v13, %v2258_v24  ;;  %v2238_v26 = vpop.f32.mrf.mxu0 }
 0x9b1   :  { %v2307_v30 = vmul.f32 %v2306_v13, %v2238_v26 }
 0x9b2   :  { %v2315_v31 = vrot.slane %v2308_v25, 4 }
 0x9b4   :  { %v2317_v11 = vsel %vm89_vm0, %v2307_v30, %v2315_v31 }
 0x9b5   :  { %v2321_v62 = vsub.f32 %v2303_v4, %v2317_v11 }
 0x9b7   :  { %v2560_v44 = vclamps-f32 %v2321_v62, 1.0 }
 0x9b9   :  { %2327 = vst [vmem:[%s3568_s6] sm:$0xff] %v2560_v44 }
 0xa16   :  { %v2278_v10 = vpop.f32.mrf.mxu2 }
 0xa17   :  { %v2298_v54 = vpop.f32.mrf.mxu3  ;;  %v2309_v34 = vmul.f32 %v2306_v13, %v2278_v10 }
 0xa18   :  { %v2310_v33 = vmul.f32 %v2306_v13, %v2298_v54 }
 0xa1a   :  { %v2316_v59 = vrot.slane %v2310_v33, 4 }
 0xa1c   :  { %v2318_v46 = vsel %vm89_vm0, %v2309_v34, %v2316_v59 }
 0xa1d   :  { %v2322_v36 = vsub.f32 %v2304_v35, %v2318_v46 }
 0xa1f   :  { %v2561_v38 = vclamps-f32 %v2322_v36, 1.0 }
 0xa21   :  { %2328 = vst [vmem:[%s3568_s6 + $0x8] sm:$0xff] %v2561_v38 }
 0xa22   :  { %2333 = vsyncpa [#allocation3], 1 }

</bundles_post_ra>
